<compile_context>
chip_gen: v6e
topology: v6e:2x2x1
jax: 0.10.0
libtpu: 0.0.40
codegen_flags: <defaults>
</compile_context>

<pallas_src>
import functools
import math

import jax
import jax.numpy as jnp
from jax.experimental import pallas as pl
from jax.experimental.pallas import tpu as pltpu


# ----------------------------------------------------------------------------
# Sizing helpers.
# ----------------------------------------------------------------------------
def _round_up(x, m):
    return ((x + m - 1) // m) * m


def _vmem_limit_bytes():
    """Generation-aware scoped-VMEM limit: ~3/4 of physical, capped at 96 MiB.

    (v5e/v6e: 128 MiB physical -> 96 MiB; v7x: 64 MiB physical -> 48 MiB.)
    """
    cap = 64 * 1024 * 1024  # conservative fallback if the query fails
    try:
        cap = int(getattr(pltpu.get_tpu_info(), "vmem_capacity_bytes", cap))
    except Exception:
        pass
    return min((cap * 3) // 4, 96 * 1024 * 1024)


def _choose_tile(n, target):
    """Largest multiple-of-8 divisor of n that is <= target (fallback: n)."""
    target = max(8, min(int(target), n))
    if n % 8 != 0:
        return n
    for t in range(target - target % 8, 7, -8):
        if n % t == 0:
            return t
    return n


def _pass1_tile_target(c, vmem_limit):
    # Stats pass streams only the x tile (f32, double-buffered); let it use
    # roughly half the VMEM budget, capped at 2048 tokens.
    return max(8, min(2048, (vmem_limit // 2) // (2 * c * 4)))


def _pass2_tile_target(c, l_pad, vmem_limit):
    # Attention pass: bf16 K/V + Wq/Wp are resident (double-buffered), plus the
    # f32 x/out tiles, the (TM, C) attn scratch and (TM, L_pad) softmax temps.
    budget = (vmem_limit * 4) // 5
    fixed = 8 * l_pad * c + 8 * c * c + (1 << 20)
    per_tok = 20 * c + 12 * l_pad
    return max(8, min(1024, (budget - fixed) // per_tok))


# ----------------------------------------------------------------------------
# Kernel 1: streaming GroupNorm statistics (sum / sumsq per channel).
# Only needed for the first layer; later layers reuse the fused-pass stats.
# ----------------------------------------------------------------------------
def _stats_kernel(x_ref, sum_ref, sq_ref):
    x = x_ref[0]                                          # (TM, C) f32

    @pl.when(pl.program_id(1) == 0)
    def _():
        sum_ref[...] = jnp.zeros_like(sum_ref)
        sq_ref[...] = jnp.zeros_like(sq_ref)

    sum_ref[0] += jnp.sum(x, axis=0, keepdims=True)       # (1, C)
    sq_ref[0] += jnp.sum(x * x, axis=0, keepdims=True)


def _stats_pass(x_tok, vmem_limit):
    B, N, C = x_tok.shape
    tm = _choose_tile(N, _pass1_tile_target(C, vmem_limit))
    return pl.pallas_call(
        _stats_kernel,
        out_shape=(jax.ShapeDtypeStruct((B, 1, C), jnp.float32),
                   jax.ShapeDtypeStruct((B, 1, C), jnp.float32)),
        grid=(B, N // tm),
        in_specs=[pl.BlockSpec((1, tm, C), lambda i, j: (i, j, 0))],
        out_specs=(pl.BlockSpec((1, 1, C), lambda i, j: (i, 0, 0)),
                   pl.BlockSpec((1, 1, C), lambda i, j: (i, 0, 0))),
        compiler_params=pltpu.CompilerParams(
            dimension_semantics=("parallel", "arbitrary"),
            vmem_limit_bytes=vmem_limit),
    )(x_tok)


# ----------------------------------------------------------------------------
# Kernel 2: K / V projection of the conditioning tokens (once per batch).
# K and V are stored (L_pad, C) in bfloat16; only V's padding rows are zeroed
# (padded-key scores are masked in the attention pass).
# ----------------------------------------------------------------------------
def _kv_proj_kernel(y_ref, wk_ref, bk_ref, wv_ref, bv_ref, k_ref, v_ref,
                    *, seq_len):
    y = y_ref[0].astype(jnp.bfloat16)                     # (L, C)
    k = (jnp.dot(y, wk_ref[...], preferred_element_type=jnp.float32)
         + bk_ref[...])                                   # (L, C) f32
    v = (jnp.dot(y, wv_ref[...], preferred_element_type=jnp.float32)
         + bv_ref[...])
    l_pad = k_ref.shape[1]
    if seq_len < l_pad:
        # Zero only V's padding rows so 0-probability x garbage can't make NaN;
        # K padding stays uninitialized (scores there are masked to -inf).
        v_ref[0, seq_len:l_pad, :] = jnp.zeros(
            (l_pad - seq_len, v_ref.shape[2]), v_ref.dtype)
    k_ref[0, 0:seq_len, :] = k.astype(k_ref.dtype)
    v_ref[0, 0:seq_len, :] = v.astype(v_ref.dtype)


def _kv_proj_pass(p, y_tok, l_pad, vmem_limit):
    B, L, C = y_tok.shape
    const = lambda i: (0, 0)
    per_b = lambda i: (i, 0, 0)
    return pl.pallas_call(
        functools.partial(_kv_proj_kernel, seq_len=L),
        out_shape=(jax.ShapeDtypeStruct((B, l_pad, C), jnp.bfloat16),
                   jax.ShapeDtypeStruct((B, l_pad, C), jnp.bfloat16)),
        grid=(B,),
        in_specs=[
            pl.BlockSpec((1, L, C), per_b),   # y
            pl.BlockSpec((C, C), const),      # Wk (bf16)
            pl.BlockSpec((1, C), const),      # bk
            pl.BlockSpec((C, C), const),      # Wv (bf16)
            pl.BlockSpec((1, C), const),      # bv
        ],
        out_specs=(pl.BlockSpec((1, l_pad, C), per_b),
                   pl.BlockSpec((1, l_pad, C), per_b)),
        compiler_params=pltpu.CompilerParams(
            dimension_semantics=("parallel",),
            vmem_limit_bytes=vmem_limit),
    )(y_tok, p["wk"], p["bk"].reshape(1, C), p["wv"], p["bv"].reshape(1, C))


# ----------------------------------------------------------------------------
# Kernel 3: fused GN-apply -> Q proj -> cross-attention -> out proj + residual,
# plus sum/sumsq of the output (GroupNorm statistics for the NEXT layer).
# ----------------------------------------------------------------------------
def _fused_attn_kernel(scale_ref, shift_ref, x_ref, k_ref, v_ref,
                       wq_ref, bq_ref, wp_ref, bp_ref,
                       o_ref, nsum_ref, nsq_ref, attn_scratch,
                       *, num_heads, head_dim, seq_len, sm_scale):
    x = x_ref[0]                                          # (TM, C) f32
    h = x * scale_ref[0] + shift_ref[0]                   # GroupNorm (precomputed affine)
    # sm_scale folded into q (C-wide multiply instead of L_pad-wide on scores).
    q = (jnp.dot(h.astype(jnp.bfloat16), wq_ref[...],
                 preferred_element_type=jnp.float32)
         + bq_ref[...]) * sm_scale                        # (TM, C) f32

    l_pad = k_ref.shape[1]
    if seq_len < l_pad:
        key_live = jax.lax.broadcasted_iota(jnp.int32, (1, l_pad), 1) < seq_len

    def head(hh):
        lo = hh * head_dim
        q_h = q[:, lo:lo + head_dim].astype(jnp.bfloat16)            # (TM, Dh)
        # Contract the head dim of K directly (K stored (L_pad, C) bf16): no
        # materialized K^T, MXU handles the transposed contraction.
        s = jax.lax.dot_general(q_h, k_ref[0, :, lo:lo + head_dim],
                                (((1,), (1,)), ((), ())),
                                preferred_element_type=jnp.float32)  # (TM, L_pad)
        if seq_len < l_pad:
            s = jnp.where(key_live, s, -1e30)
        m = jnp.max(s, axis=-1, keepdims=True)
        pexp = jnp.exp(s - m)
        denom = jnp.sum(pexp, axis=-1, keepdims=True)
        o_h = jnp.dot(pexp.astype(jnp.bfloat16),
                      v_ref[0, :, lo:lo + head_dim],
                      preferred_element_type=jnp.float32)            # (TM, Dh)
        return o_h * pl.reciprocal(denom, approx=True)

    if num_heads == 1:
        attn = head(0)
    else:
        # Write each head into its slice of one (TM, C) scratch: no concatenate,
        # bounded live ranges.
        for hh in range(num_heads):
            attn_scratch[:, hh * head_dim:(hh + 1) * head_dim] = head(hh)
        attn = attn_scratch[...]

    # Output projection + residual (x tile already resident in VMEM).
    out = (x
           + jnp.dot(attn.astype(jnp.bfloat16), wp_ref[...],
                     preferred_element_type=jnp.float32)
           + bp_ref[...])
    o_ref[0] = out

    # Next layer's GroupNorm statistics, fused (saves a full x re-read).
    @pl.when(pl.program_id(1) == 0)
    def _():
        nsum_ref[...] = jnp.zeros_like(nsum_ref)
        nsq_ref[...] = jnp.zeros_like(nsq_ref)

    nsum_ref[0] += jnp.sum(out, axis=0, keepdims=True)
    nsq_ref[0] += jnp.sum(out * out, axis=0, keepdims=True)


def _fused_attn_pass(p, scale, shift, x_tok, k, v, num_heads, head_dim,
                     seq_len, vmem_limit):
    B, N, C = x_tok.shape
    l_pad = k.shape[1]
    tm = _choose_tile(N, _pass2_tile_target(C, l_pad, vmem_limit))
    # TODO(synk): for very large L_pad the (TM, L_pad) score matrix should be
    # KV-tiled with an online softmax (flash-style) to keep TM large on v7x.
    sm_scale = 1.0 / math.sqrt(head_dim)
    per_batch = lambda i, j: (i, 0, 0)
    tok_tile = lambda i, j: (i, j, 0)
    const2d = lambda i, j: (0, 0)

    return pl.pallas_call(
        functools.partial(_fused_attn_kernel, num_heads=num_heads,
                          head_dim=head_dim, seq_len=seq_len,
                          sm_scale=sm_scale),
        out_shape=(jax.ShapeDtypeStruct((B, N, C), jnp.float32),
                   jax.ShapeDtypeStruct((B, 1, C), jnp.float32),
                   jax.ShapeDtypeStruct((B, 1, C), jnp.float32)),
        grid=(B, N // tm),
        in_specs=[
            pl.BlockSpec((1, 1, C), per_batch),        # scale
            pl.BlockSpec((1, 1, C), per_batch),        # shift
            pl.BlockSpec((1, tm, C), tok_tile),        # x (also the residual)
            pl.BlockSpec((1, l_pad, C), per_batch),    # K (bf16)
            pl.BlockSpec((1, l_pad, C), per_batch),    # V (bf16)
            pl.BlockSpec((C, C), const2d),             # Wq (bf16)
            pl.BlockSpec((1, C), const2d),             # bq
            pl.BlockSpec((C, C), const2d),             # Wp (bf16)
            pl.BlockSpec((1, C), const2d),             # bp
        ],
        out_specs=(pl.BlockSpec((1, tm, C), tok_tile),
                   pl.BlockSpec((1, 1, C), per_batch),
                   pl.BlockSpec((1, 1, C), per_batch)),
        scratch_shapes=[pltpu.VMEM((tm, C), jnp.float32)],
        compiler_params=pltpu.CompilerParams(
            dimension_semantics=("parallel", "arbitrary"),
            vmem_limit_bytes=vmem_limit),
    )(scale, shift, x_tok, k, v,
      p["wq"], p["bq"].reshape(1, C), p["wp"], p["bp"].reshape(1, C))


# ----------------------------------------------------------------------------
# Tiny host-side glue: fold sum/sumsq into per-channel GroupNorm scale/shift.
# ----------------------------------------------------------------------------
def _scale_shift_from_stats(s1, s2, gamma, beta, n_tokens, num_groups, eps):
    B, _, C = s1.shape
    cg = C // num_groups
    cnt = float(n_tokens * cg)
    g_sum = s1.reshape(B, num_groups, cg).sum(axis=-1)
    g_sq = s2.reshape(B, num_groups, cg).sum(axis=-1)
    mean = g_sum / cnt
    # E[x^2]-E[x]^2 in f32; clamp to avoid negative variance from cancellation.
    var = jnp.maximum(g_sq / cnt - mean * mean, 0.0)
    rstd = jax.lax.rsqrt(var + eps)
    mean_c = jnp.repeat(mean, cg, axis=-1).reshape(B, 1, C)
    rstd_c = jnp.repeat(rstd, cg, axis=-1).reshape(B, 1, C)
    scale = gamma.reshape(1, 1, C) * rstd_c
    shift = beta.reshape(1, 1, C) - mean_c * scale
    return scale, shift


# ----------------------------------------------------------------------------
# Module: parameter init + forward.
# ----------------------------------------------------------------------------
def init_layer_params(key, n_channels):
    ks = jax.random.split(key, 4)

    def w(k):  # MXU operands stored bf16
        return (0.02 * jax.random.normal(k, (n_channels, n_channels))
                ).astype(jnp.bfloat16)

    zeros = jnp.zeros((n_channels,), jnp.float32)
    return dict(
        gn_gamma=jnp.ones((n_channels,), jnp.float32),
        gn_beta=zeros,
        wq=w(ks[0]), bq=zeros,
        wk=w(ks[1]), bk=zeros,
        wv=w(ks[2]), bv=zeros,
        wp=w(ks[3]), bp=zeros,
    )


def conditional_unet_decoder3d(params_list, x, y, num_heads, head_dim, *, eps=1e-5):
    """x: (B, C, D, H, W) NCDHW ; y: (B, C, Hy, Wy) NCHW ; returns NCDHW."""
    B, C, D, H, W = x.shape
    _, _, Hy, Wy = y.shape
    N = D * H * W
    L = Hy * Wy
    x_tok = jnp.transpose(x, (0, 2, 3, 4, 1)).reshape(B, N, C)
    y_tok = jnp.transpose(y, (0, 2, 3, 1)).reshape(B, L, C)

    num_groups = min(32, C)
    vmem_limit = _vmem_limit_bytes()
    l_pad = _round_up(max(L, 128), 128)

    # Layer-0 GroupNorm statistics; later layers reuse the fused-pass stats.
    s1, s2 = _stats_pass(x_tok, vmem_limit)
    for p in params_list:
        scale, shift = _scale_shift_from_stats(
            s1, s2, p["gn_gamma"], p["gn_beta"], N, num_groups, eps)
        k, v = _kv_proj_pass(p, y_tok, l_pad, vmem_limit)
        x_tok, s1, s2 = _fused_attn_pass(
            p, scale, shift, x_tok, k, v, num_heads, head_dim, L, vmem_limit)

    return jnp.transpose(x_tok.reshape(B, D, H, W, C), (0, 4, 1, 2, 3))


# ----------------------------------------------------------------------------
if __name__ == "__main__":
    n_channels = 128          # multiple of 128 (head_dim = 128 per the spec)
    num_layers = 2
    num_heads = n_channels // 128
    head_dim = 128
    B, D, H, W = 2, 4, 4, 4   # voxel grid -> N = 64 tokens
    Hy, Wy = 2, 4             # panoramic conditioning -> L = 8 tokens

    key = jax.random.PRNGKey(0)
    kx, ky, kp = jax.random.split(key, 3)
    x = jax.random.normal(kx, (B, n_channels, D, H, W), jnp.float32)
    y = jax.random.normal(ky, (B, n_channels, Hy, Wy), jnp.float32)
    params_list = [
        init_layer_params(k, n_channels) for k in jax.random.split(kp, num_layers)
    ]

    fwd = jax.jit(conditional_unet_decoder3d, static_argnums=(3, 4))
    out = fwd(params_list, x, y, num_heads, head_dim)
    jax.block_until_ready(out)
    assert out.shape == x.shape and out.dtype == jnp.float32
    assert bool(jnp.all(jnp.isfinite(out)))
    print("KERNEL_OK")
</pallas_src>

<mosaic_0001>
module attributes {stable_mosaic.version = 11 : i64} {
  func.func @_stats_kernel(%arg0: i32, %arg1: i32, %arg2: memref<1x64x128xf32, #tpu.memory_space<vmem>>, %arg3: memref<1x1x128xf32, #tpu.memory_space<vmem>>, %arg4: memref<1x1x128xf32, #tpu.memory_space<vmem>>) attributes {dimension_semantics = [#tpu.dimension_semantics<parallel>, #tpu.dimension_semantics<arbitrary>], iteration_bounds = array<i64: 2, 1>, scalar_prefetch = 0 : i64, scratch_operands = 0 : i64, tpu.core_type = #tpu.core_type<tc>, window_params = [{transform_indices = @transform_0, window_bounds = array<i64: 1, 64, 128>}, {transform_indices = @transform_1, window_bounds = array<i64: 1, 1, 128>}, {transform_indices = @transform_2, window_bounds = array<i64: 1, 1, 128>}]} {
    %c0 = arith.constant 0 : index
    %c0_0 = arith.constant 0 : index
    %c0_1 = arith.constant 0 : index
    %0 = vector.load %arg2[%c0, %c0_0, %c0_1] : memref<1x64x128xf32, #tpu.memory_space<vmem>>, vector<1x64x128xf32>
    %1 = vector.shape_cast %0 : vector<1x64x128xf32> to vector<64x128xf32>
    %c0_i32 = arith.constant 0 : i32
    %2 = arith.cmpi eq, %arg1, %c0_i32 : i32
    %3 = arith.extui %2 : i1 to i32
    %c0_i32_2 = arith.constant 0 : i32
    %4 = arith.cmpi ne, %3, %c0_i32_2 : i32
    scf.if %4 {
      %cst_16 = arith.constant 0.000000e+00 : f32
      %22 = vector.broadcast %cst_16 : f32 to vector<1x1x128xf32>
      %c0_17 = arith.constant 0 : index
      %c0_18 = arith.constant 0 : index
      %c0_19 = arith.constant 0 : index
      %23 = vector.load %arg3[%c0_17, %c0_18, %c0_19] : memref<1x1x128xf32, #tpu.memory_space<vmem>>, vector<1x1x128xf32>
      tpu.vector_store %arg3[%c0_17, %c0_18, %c0_19], %22 {strides = array<i32>} : memref<1x1x128xf32, #tpu.memory_space<vmem>>, vector<1x1x128xf32>,
      %cst_20 = arith.constant 0.000000e+00 : f32
      %24 = vector.broadcast %cst_20 : f32 to vector<1x1x128xf32>
      %c0_21 = arith.constant 0 : index
      %c0_22 = arith.constant 0 : index
      %c0_23 = arith.constant 0 : index
      %25 = vector.load %arg4[%c0_21, %c0_22, %c0_23] : memref<1x1x128xf32, #tpu.memory_space<vmem>>, vector<1x1x128xf32>
      tpu.vector_store %arg4[%c0_21, %c0_22, %c0_23], %24 {strides = array<i32>} : memref<1x1x128xf32, #tpu.memory_space<vmem>>, vector<1x1x128xf32>,
    } else {
    }
    %c0_3 = arith.constant 0 : index
    %c0_4 = arith.constant 0 : index
    %c0_5 = arith.constant 0 : index
    %5 = vector.load %arg3[%c0_3, %c0_4, %c0_5] : memref<1x1x128xf32, #tpu.memory_space<vmem>>, vector<1x1x128xf32>
    %6 = vector.shape_cast %5 : vector<1x1x128xf32> to vector<1x128xf32>
    %cst = arith.constant dense<0.000000e+00> : vector<128xf32>
    %7 = vector.multi_reduction <add>, %1, %cst [0] : vector<64x128xf32> to vector<128xf32>
    %8 = vector.shape_cast %7 : vector<128xf32> to vector<1x128xf32>
    %9 = arith.addf %6, %8 : vector<1x128xf32>
    %c0_6 = arith.constant 0 : index
    %c0_7 = arith.constant 0 : index
    %c0_8 = arith.constant 0 : index
    %10 = vector.load %arg3[%c0_6, %c0_7, %c0_8] : memref<1x1x128xf32, #tpu.memory_space<vmem>>, vector<1x1x128xf32>
    %11 = vector.shape_cast %10 : vector<1x1x128xf32> to vector<1x128xf32>
    %12 = vector.shape_cast %9 : vector<1x128xf32> to vector<1x1x128xf32>
    tpu.vector_store %arg3[%c0_6, %c0_7, %c0_8], %12 {strides = array<i32>} : memref<1x1x128xf32, #tpu.memory_space<vmem>>, vector<1x1x128xf32>,
    %c0_9 = arith.constant 0 : index
    %c0_10 = arith.constant 0 : index
    %c0_11 = arith.constant 0 : index
    %13 = vector.load %arg4[%c0_9, %c0_10, %c0_11] : memref<1x1x128xf32, #tpu.memory_space<vmem>>, vector<1x1x128xf32>
    %14 = vector.shape_cast %13 : vector<1x1x128xf32> to vector<1x128xf32>
    %15 = arith.mulf %1, %1 : vector<64x128xf32>
    %cst_12 = arith.constant dense<0.000000e+00> : vector<128xf32>
    %16 = vector.multi_reduction <add>, %15, %cst_12 [0] : vector<64x128xf32> to vector<128xf32>
    %17 = vector.shape_cast %16 : vector<128xf32> to vector<1x128xf32>
    %18 = arith.addf %14, %17 : vector<1x128xf32>
    %c0_13 = arith.constant 0 : index
    %c0_14 = arith.constant 0 : index
    %c0_15 = arith.constant 0 : index
    %19 = vector.load %arg4[%c0_13, %c0_14, %c0_15] : memref<1x1x128xf32, #tpu.memory_space<vmem>>, vector<1x1x128xf32>
    %20 = vector.shape_cast %19 : vector<1x1x128xf32> to vector<1x128xf32>
    %21 = vector.shape_cast %18 : vector<1x128xf32> to vector<1x1x128xf32>
    tpu.vector_store %arg4[%c0_13, %c0_14, %c0_15], %21 {strides = array<i32>} : memref<1x1x128xf32, #tpu.memory_space<vmem>>, vector<1x1x128xf32>,
    return
  }
  func.func @transform_0(%arg0: i32, %arg1: i32) -> (i32, i32, i32) {
    %c0_i32 = arith.constant 0 : i32
    %c0_i32_0 = arith.constant 0 : i32
    return %arg0, %arg1, %c0_i32 : i32, i32, i32
  }
  func.func @transform_1(%arg0: i32, %arg1: i32) -> (i32, i32, i32) {
    %c0_i32 = arith.constant 0 : i32
    %c0_i32_0 = arith.constant 0 : i32
    %c0_i32_1 = arith.constant 0 : i32
    return %arg0, %c0_i32, %c0_i32_0 : i32, i32, i32
  }
  func.func @transform_2(%arg0: i32, %arg1: i32) -> (i32, i32, i32) {
    %c0_i32 = arith.constant 0 : i32
    %c0_i32_0 = arith.constant 0 : i32
    %c0_i32_1 = arith.constant 0 : i32
    return %arg0, %c0_i32, %c0_i32_0 : i32, i32, i32
  }
}

module attributes {stable_mosaic.version = 11 : i64} {
  func.func @_kv_proj_kernel(%arg0: i32, %arg1: memref<1x8x128xf32, #tpu.memory_space<vmem>>, %arg2: memref<128x128xbf16, #tpu.memory_space<vmem>>, %arg3: memref<1x128xf32, #tpu.memory_space<vmem>>, %arg4: memref<128x128xbf16, #tpu.memory_space<vmem>>, %arg5: memref<1x128xf32, #tpu.memory_space<vmem>>, %arg6: memref<1x128x128xbf16, #tpu.memory_space<vmem>>, %arg7: memref<1x128x128xbf16, #tpu.memory_space<vmem>>) attributes {dimension_semantics = [#tpu.dimension_semantics<parallel>], iteration_bounds = array<i64: 2>, scalar_prefetch = 0 : i64, scratch_operands = 0 : i64, tpu.core_type = #tpu.core_type<tc>, window_params = [{transform_indices = @transform_0, window_bounds = array<i64: 1, 8, 128>}, {pipeline_mode = #tpu.pipeline_mode<synchronous>, transform_indices = @transform_1, window_bounds = array<i64: 128, 128>}, {pipeline_mode = #tpu.pipeline_mode<synchronous>, transform_indices = @transform_2, window_bounds = array<i64: 1, 128>}, {pipeline_mode = #tpu.pipeline_mode<synchronous>, transform_indices = @transform_3, window_bounds = array<i64: 128, 128>}, {pipeline_mode = #tpu.pipeline_mode<synchronous>, transform_indices = @transform_4, window_bounds = array<i64: 1, 128>}, {transform_indices = @transform_5, window_bounds = array<i64: 1, 128, 128>}, {transform_indices = @transform_6, window_bounds = array<i64: 1, 128, 128>}]} {
    %c0 = arith.constant 0 : index
    %c0_0 = arith.constant 0 : index
    %c0_1 = arith.constant 0 : index
    %0 = vector.load %arg1[%c0, %c0_0, %c0_1] : memref<1x8x128xf32, #tpu.memory_space<vmem>>, vector<1x8x128xf32>
    %1 = vector.shape_cast %0 : vector<1x8x128xf32> to vector<8x128xf32>
    %2 = arith.truncf %1 : vector<8x128xf32> to vector<8x128xbf16>
    %c0_2 = arith.constant 0 : index
    %c0_3 = arith.constant 0 : index
    %3 = vector.load %arg2[%c0_2, %c0_3] : memref<128x128xbf16, #tpu.memory_space<vmem>>, vector<128x128xbf16>
    %cst = arith.constant dense<0.000000e+00> : vector<8x128xf32>
    %4 = tpu.matmul %2, %3, %cst {dimension_numbers = #tpu.dot_dimension_numbers<[1], [0], [0], [1], [0, 0, 1, 1], [], []>} : vector<8x128xbf16>, vector<128x128xbf16>, vector<8x128xf32> -> vector<8x128xf32>
    %c0_4 = arith.constant 0 : index
    %c0_5 = arith.constant 0 : index
    %5 = vector.load %arg3[%c0_4, %c0_5] : memref<1x128xf32, #tpu.memory_space<vmem>>, vector<1x128xf32>
    %6 = vector.broadcast %5 : vector<1x128xf32> to vector<8x128xf32>
    %7 = arith.addf %4, %6 : vector<8x128xf32>
    %c0_6 = arith.constant 0 : index
    %c0_7 = arith.constant 0 : index
    %8 = vector.load %arg4[%c0_6, %c0_7] : memref<128x128xbf16, #tpu.memory_space<vmem>>, vector<128x128xbf16>
    %cst_8 = arith.constant dense<0.000000e+00> : vector<8x128xf32>
    %9 = tpu.matmul %2, %8, %cst_8 {dimension_numbers = #tpu.dot_dimension_numbers<[1], [0], [0], [1], [0, 0, 1, 1], [], []>} : vector<8x128xbf16>, vector<128x128xbf16>, vector<8x128xf32> -> vector<8x128xf32>
    %c0_9 = arith.constant 0 : index
    %c0_10 = arith.constant 0 : index
    %10 = vector.load %arg5[%c0_9, %c0_10] : memref<1x128xf32, #tpu.memory_space<vmem>>, vector<1x128xf32>
    %11 = vector.broadcast %10 : vector<1x128xf32> to vector<8x128xf32>
    %12 = arith.addf %9, %11 : vector<8x128xf32>
    %cst_11 = arith.constant 0.000000e+00 : bf16
    %13 = vector.broadcast %cst_11 : bf16 to vector<120x128xbf16>
    %c0_12 = arith.constant 0 : index
    %c8 = arith.constant 8 : index
    %c0_13 = arith.constant 0 : index
    %14 = vector.load %arg7[%c0_12, %c8, %c0_13] : memref<1x128x128xbf16, #tpu.memory_space<vmem>>, vector<1x120x128xbf16>
    %15 = vector.shape_cast %14 : vector<1x120x128xbf16> to vector<120x128xbf16>
    %16 = vector.shape_cast %13 : vector<120x128xbf16> to vector<1x120x128xbf16>
    tpu.vector_store %arg7[%c0_12, %c8, %c0_13], %16 {strides = array<i32>} : memref<1x128x128xbf16, #tpu.memory_space<vmem>>, vector<1x120x128xbf16>,
    %17 = arith.truncf %7 : vector<8x128xf32> to vector<8x128xbf16>
    %c0_14 = arith.constant 0 : index
    %c0_15 = arith.constant 0 : index
    %c0_16 = arith.constant 0 : index
    %18 = vector.load %arg6[%c0_14, %c0_15, %c0_16] : memref<1x128x128xbf16, #tpu.memory_space<vmem>>, vector<1x8x128xbf16>
    %19 = vector.shape_cast %18 : vector<1x8x128xbf16> to vector<8x128xbf16>
    %20 = vector.shape_cast %17 : vector<8x128xbf16> to vector<1x8x128xbf16>
    tpu.vector_store %arg6[%c0_14, %c0_15, %c0_16], %20 {strides = array<i32>} : memref<1x128x128xbf16, #tpu.memory_space<vmem>>, vector<1x8x128xbf16>,
    %21 = arith.truncf %12 : vector<8x128xf32> to vector<8x128xbf16>
    %c0_17 = arith.constant 0 : index
    %c0_18 = arith.constant 0 : index
    %c0_19 = arith.constant 0 : index
    %22 = vector.load %arg7[%c0_17, %c0_18, %c0_19] : memref<1x128x128xbf16, #tpu.memory_space<vmem>>, vector<1x8x128xbf16>
    %23 = vector.shape_cast %22 : vector<1x8x128xbf16> to vector<8x128xbf16>
    %24 = vector.shape_cast %21 : vector<8x128xbf16> to vector<1x8x128xbf16>
    tpu.vector_store %arg7[%c0_17, %c0_18, %c0_19], %24 {strides = array<i32>} : memref<1x128x128xbf16, #tpu.memory_space<vmem>>, vector<1x8x128xbf16>,
    return
  }
  func.func @transform_0(%arg0: i32) -> (i32, i32, i32) {
    %c0_i32 = arith.constant 0 : i32
    %c0_i32_0 = arith.constant 0 : i32
    %c0_i32_1 = arith.constant 0 : i32
    return %arg0, %c0_i32, %c0_i32_0 : i32, i32, i32
  }
  func.func @transform_1(%arg0: i32) -> (i32, i32) {
    %c0_i32 = arith.constant 0 : i32
    %c0_i32_0 = arith.constant 0 : i32
    %c0_i32_1 = arith.constant 0 : i32
    return %c0_i32, %c0_i32_0 : i32, i32
  }
  func.func @transform_2(%arg0: i32) -> (i32, i32) {
    %c0_i32 = arith.constant 0 : i32
    %c0_i32_0 = arith.constant 0 : i32
    %c0_i32_1 = arith.constant 0 : i32
    return %c0_i32, %c0_i32_0 : i32, i32
  }
  func.func @transform_3(%arg0: i32) -> (i32, i32) {
    %c0_i32 = arith.constant 0 : i32
    %c0_i32_0 = arith.constant 0 : i32
    %c0_i32_1 = arith.constant 0 : i32
    return %c0_i32, %c0_i32_0 : i32, i32
  }
  func.func @transform_4(%arg0: i32) -> (i32, i32) {
    %c0_i32 = arith.constant 0 : i32
    %c0_i32_0 = arith.constant 0 : i32
    %c0_i32_1 = arith.constant 0 : i32
    return %c0_i32, %c0_i32_0 : i32, i32
  }
  func.func @transform_5(%arg0: i32) -> (i32, i32, i32) {
    %c0_i32 = arith.constant 0 : i32
    %c0_i32_0 = arith.constant 0 : i32
    %c0_i32_1 = arith.constant 0 : i32
    return %arg0, %c0_i32, %c0_i32_0 : i32, i32, i32
  }
  func.func @transform_6(%arg0: i32) -> (i32, i32, i32) {
    %c0_i32 = arith.constant 0 : i32
    %c0_i32_0 = arith.constant 0 : i32
    %c0_i32_1 = arith.constant 0 : i32
    return %arg0, %c0_i32, %c0_i32_0 : i32, i32, i32
  }
}

module attributes {stable_mosaic.version = 11 : i64} {
  func.func @_fused_attn_kernel(%arg0: i32, %arg1: i32, %arg2: memref<1x1x128xf32, #tpu.memory_space<vmem>>, %arg3: memref<1x1x128xf32, #tpu.memory_space<vmem>>, %arg4: memref<1x64x128xf32, #tpu.memory_space<vmem>>, %arg5: memref<1x128x128xbf16, #tpu.memory_space<vmem>>, %arg6: memref<1x128x128xbf16, #tpu.memory_space<vmem>>, %arg7: memref<128x128xbf16, #tpu.memory_space<vmem>>, %arg8: memref<1x128xf32, #tpu.memory_space<vmem>>, %arg9: memref<128x128xbf16, #tpu.memory_space<vmem>>, %arg10: memref<1x128xf32, #tpu.memory_space<vmem>>, %arg11: memref<1x64x128xf32, #tpu.memory_space<vmem>>, %arg12: memref<1x1x128xf32, #tpu.memory_space<vmem>>, %arg13: memref<1x1x128xf32, #tpu.memory_space<vmem>>, %arg14: memref<64x128xf32, #tpu.memory_space<vmem>>) attributes {dimension_semantics = [#tpu.dimension_semantics<parallel>, #tpu.dimension_semantics<arbitrary>], iteration_bounds = array<i64: 2, 1>, scalar_prefetch = 0 : i64, scratch_operands = 1 : i64, tpu.core_type = #tpu.core_type<tc>, window_params = [{transform_indices = @transform_0, window_bounds = array<i64: 1, 1, 128>}, {transform_indices = @transform_1, window_bounds = array<i64: 1, 1, 128>}, {transform_indices = @transform_2, window_bounds = array<i64: 1, 64, 128>}, {transform_indices = @transform_3, window_bounds = array<i64: 1, 128, 128>}, {transform_indices = @transform_4, window_bounds = array<i64: 1, 128, 128>}, {pipeline_mode = #tpu.pipeline_mode<synchronous>, transform_indices = @transform_5, window_bounds = array<i64: 128, 128>}, {pipeline_mode = #tpu.pipeline_mode<synchronous>, transform_indices = @transform_6, window_bounds = array<i64: 1, 128>}, {pipeline_mode = #tpu.pipeline_mode<synchronous>, transform_indices = @transform_7, window_bounds = array<i64: 128, 128>}, {pipeline_mode = #tpu.pipeline_mode<synchronous>, transform_indices = @transform_8, window_bounds = array<i64: 1, 128>}, {transform_indices = @transform_9, window_bounds = array<i64: 1, 64, 128>}, {transform_indices = @transform_10, window_bounds = array<i64: 1, 1, 128>}, {transform_indices = @transform_11, window_bounds = array<i64: 1, 1, 128>}]} {
    %c0 = arith.constant 0 : index
    %c0_0 = arith.constant 0 : index
    %c0_1 = arith.constant 0 : index
    %0 = vector.load %arg4[%c0, %c0_0, %c0_1] : memref<1x64x128xf32, #tpu.memory_space<vmem>>, vector<1x64x128xf32>
    %1 = vector.shape_cast %0 : vector<1x64x128xf32> to vector<64x128xf32>
    %c0_2 = arith.constant 0 : index
    %c0_3 = arith.constant 0 : index
    %c0_4 = arith.constant 0 : index
    %2 = vector.load %arg2[%c0_2, %c0_3, %c0_4] : memref<1x1x128xf32, #tpu.memory_space<vmem>>, vector<1x1x128xf32>
    %3 = vector.shape_cast %2 : vector<1x1x128xf32> to vector<1x128xf32>
    %4 = vector.broadcast %3 : vector<1x128xf32> to vector<64x128xf32>
    %5 = arith.mulf %1, %4 : vector<64x128xf32>
    %c0_5 = arith.constant 0 : index
    %c0_6 = arith.constant 0 : index
    %c0_7 = arith.constant 0 : index
    %6 = vector.load %arg3[%c0_5, %c0_6, %c0_7] : memref<1x1x128xf32, #tpu.memory_space<vmem>>, vector<1x1x128xf32>
    %7 = vector.shape_cast %6 : vector<1x1x128xf32> to vector<1x128xf32>
    %8 = vector.broadcast %7 : vector<1x128xf32> to vector<64x128xf32>
    %9 = arith.addf %5, %8 : vector<64x128xf32>
    %10 = arith.truncf %9 : vector<64x128xf32> to vector<64x128xbf16>
    %c0_8 = arith.constant 0 : index
    %c0_9 = arith.constant 0 : index
    %11 = vector.load %arg7[%c0_8, %c0_9] : memref<128x128xbf16, #tpu.memory_space<vmem>>, vector<128x128xbf16>
    %cst = arith.constant dense<0.000000e+00> : vector<64x128xf32>
    %12 = tpu.matmul %10, %11, %cst {dimension_numbers = #tpu.dot_dimension_numbers<[1], [0], [0], [1], [0, 0, 1, 1], [], []>} : vector<64x128xbf16>, vector<128x128xbf16>, vector<64x128xf32> -> vector<64x128xf32>
    %c0_10 = arith.constant 0 : index
    %c0_11 = arith.constant 0 : index
    %13 = vector.load %arg8[%c0_10, %c0_11] : memref<1x128xf32, #tpu.memory_space<vmem>>, vector<1x128xf32>
    %14 = vector.broadcast %13 : vector<1x128xf32> to vector<64x128xf32>
    %15 = arith.addf %12, %14 : vector<64x128xf32>
    %cst_12 = arith.constant 0.0883883461 : f32
    %16 = vector.broadcast %cst_12 : f32 to vector<64x128xf32>
    %17 = arith.mulf %15, %16 : vector<64x128xf32>
    %18 = tpu.iota {dimensions = array<i32: 1>} : vector<1x128xi32>
    %c8_i32 = arith.constant 8 : i32
    %19 = vector.broadcast %c8_i32 : i32 to vector<1x128xi32>
    %20 = arith.cmpi slt, %18, %19 : vector<1x128xi32>
    %21 = arith.truncf %17 : vector<64x128xf32> to vector<64x128xbf16>
    %c0_13 = arith.constant 0 : index
    %c0_14 = arith.constant 0 : index
    %c0_15 = arith.constant 0 : index
    %22 = vector.load %arg5[%c0_13, %c0_14, %c0_15] : memref<1x128x128xbf16, #tpu.memory_space<vmem>>, vector<1x128x128xbf16>
    %23 = vector.shape_cast %22 : vector<1x128x128xbf16> to vector<128x128xbf16>
    %cst_16 = arith.constant dense<0.000000e+00> : vector<64x128xf32>
    %24 = tpu.matmul %21, %23, %cst_16 {dimension_numbers = #tpu.dot_dimension_numbers<[1], [1], [0], [0], [0, 0, 1, 0], [], []>} : vector<64x128xbf16>, vector<128x128xbf16>, vector<64x128xf32> -> vector<64x128xf32>
    %cst_17 = arith.constant -1.000000e+30 : f32
    %25 = vector.shape_cast %20 : vector<1x128xi1> to vector<1x128xi1>
    %26 = vector.broadcast %25 : vector<1x128xi1> to vector<64x128xi1>
    %27 = vector.broadcast %cst_17 : f32 to vector<64x128xf32>
    %28 = arith.select %26, %24, %27 : vector<64x128xi1>, vector<64x128xf32>
    %cst_18 = arith.constant dense<0xFF800000> : vector<64xf32>
    %29 = vector.multi_reduction <maximumf>, %28, %cst_18 [1] : vector<64x128xf32> to vector<64xf32>
    %30 = vector.shape_cast %29 : vector<64xf32> to vector<64x1xf32>
    %31 = vector.broadcast %30 : vector<64x1xf32> to vector<64x128xf32>
    %32 = arith.subf %28, %31 : vector<64x128xf32>
    %33 = math.exp %32 : vector<64x128xf32>
    %cst_19 = arith.constant dense<0.000000e+00> : vector<64xf32>
    %34 = vector.multi_reduction <add>, %33, %cst_19 [1] : vector<64x128xf32> to vector<64xf32>
    %35 = vector.shape_cast %34 : vector<64xf32> to vector<64x1xf32>
    %36 = arith.truncf %33 : vector<64x128xf32> to vector<64x128xbf16>
    %c0_20 = arith.constant 0 : index
    %c0_21 = arith.constant 0 : index
    %c0_22 = arith.constant 0 : index
    %37 = vector.load %arg6[%c0_20, %c0_21, %c0_22] : memref<1x128x128xbf16, #tpu.memory_space<vmem>>, vector<1x128x128xbf16>
    %38 = vector.shape_cast %37 : vector<1x128x128xbf16> to vector<128x128xbf16>
    %cst_23 = arith.constant dense<0.000000e+00> : vector<64x128xf32>
    %39 = tpu.matmul %36, %38, %cst_23 {dimension_numbers = #tpu.dot_dimension_numbers<[1], [0], [0], [1], [0, 0, 1, 1], [], []>} : vector<64x128xbf16>, vector<128x128xbf16>, vector<64x128xf32> -> vector<64x128xf32>
    %40 = tpu.reciprocal %35 {approx = true} : vector<64x1xf32> -> vector<64x1xf32>
    %41 = vector.broadcast %40 : vector<64x1xf32> to vector<64x128xf32>
    %42 = arith.mulf %39, %41 : vector<64x128xf32>
    %43 = arith.truncf %42 : vector<64x128xf32> to vector<64x128xbf16>
    %c0_24 = arith.constant 0 : index
    %c0_25 = arith.constant 0 : index
    %44 = vector.load %arg9[%c0_24, %c0_25] : memref<128x128xbf16, #tpu.memory_space<vmem>>, vector<128x128xbf16>
    %cst_26 = arith.constant dense<0.000000e+00> : vector<64x128xf32>
    %45 = tpu.matmul %43, %44, %cst_26 {dimension_numbers = #tpu.dot_dimension_numbers<[1], [0], [0], [1], [0, 0, 1, 1], [], []>} : vector<64x128xbf16>, vector<128x128xbf16>, vector<64x128xf32> -> vector<64x128xf32>
    %46 = arith.addf %1, %45 : vector<64x128xf32>
    %c0_27 = arith.constant 0 : index
    %c0_28 = arith.constant 0 : index
    %47 = vector.load %arg10[%c0_27, %c0_28] : memref<1x128xf32, #tpu.memory_space<vmem>>, vector<1x128xf32>
    %48 = vector.broadcast %47 : vector<1x128xf32> to vector<64x128xf32>
    %49 = arith.addf %46, %48 : vector<64x128xf32>
    %c0_29 = arith.constant 0 : index
    %c0_30 = arith.constant 0 : index
    %c0_31 = arith.constant 0 : index
    %50 = vector.load %arg11[%c0_29, %c0_30, %c0_31] : memref<1x64x128xf32, #tpu.memory_space<vmem>>, vector<1x64x128xf32>
    %51 = vector.shape_cast %50 : vector<1x64x128xf32> to vector<64x128xf32>
    %52 = vector.shape_cast %49 : vector<64x128xf32> to vector<1x64x128xf32>
    tpu.vector_store %arg11[%c0_29, %c0_30, %c0_31], %52 {strides = array<i32>} : memref<1x64x128xf32, #tpu.memory_space<vmem>>, vector<1x64x128xf32>,
    %c0_i32 = arith.constant 0 : i32
    %53 = arith.cmpi eq, %arg1, %c0_i32 : i32
    %54 = arith.extui %53 : i1 to i32
    %c0_i32_32 = arith.constant 0 : i32
    %55 = arith.cmpi ne, %54, %c0_i32_32 : i32
    scf.if %55 {
      %cst_47 = arith.constant 0.000000e+00 : f32
      %73 = vector.broadcast %cst_47 : f32 to vector<1x1x128xf32>
      %c0_48 = arith.constant 0 : index
      %c0_49 = arith.constant 0 : index
      %c0_50 = arith.constant 0 : index
      %74 = vector.load %arg12[%c0_48, %c0_49, %c0_50] : memref<1x1x128xf32, #tpu.memory_space<vmem>>, vector<1x1x128xf32>
      tpu.vector_store %arg12[%c0_48, %c0_49, %c0_50], %73 {strides = array<i32>} : memref<1x1x128xf32, #tpu.memory_space<vmem>>, vector<1x1x128xf32>,
      %cst_51 = arith.constant 0.000000e+00 : f32
      %75 = vector.broadcast %cst_51 : f32 to vector<1x1x128xf32>
      %c0_52 = arith.constant 0 : index
      %c0_53 = arith.constant 0 : index
      %c0_54 = arith.constant 0 : index
      %76 = vector.load %arg13[%c0_52, %c0_53, %c0_54] : memref<1x1x128xf32, #tpu.memory_space<vmem>>, vector<1x1x128xf32>
      tpu.vector_store %arg13[%c0_52, %c0_53, %c0_54], %75 {strides = array<i32>} : memref<1x1x128xf32, #tpu.memory_space<vmem>>, vector<1x1x128xf32>,
    } else {
    }
    %c0_33 = arith.constant 0 : index
    %c0_34 = arith.constant 0 : index
    %c0_35 = arith.constant 0 : index
    %56 = vector.load %arg12[%c0_33, %c0_34, %c0_35] : memref<1x1x128xf32, #tpu.memory_space<vmem>>, vector<1x1x128xf32>
    %57 = vector.shape_cast %56 : vector<1x1x128xf32> to vector<1x128xf32>
    %cst_36 = arith.constant dense<0.000000e+00> : vector<128xf32>
    %58 = vector.multi_reduction <add>, %49, %cst_36 [0] : vector<64x128xf32> to vector<128xf32>
    %59 = vector.shape_cast %58 : vector<128xf32> to vector<1x128xf32>
    %60 = arith.addf %57, %59 : vector<1x128xf32>
    %c0_37 = arith.constant 0 : index
    %c0_38 = arith.constant 0 : index
    %c0_39 = arith.constant 0 : index
    %61 = vector.load %arg12[%c0_37, %c0_38, %c0_39] : memref<1x1x128xf32, #tpu.memory_space<vmem>>, vector<1x1x128xf32>
    %62 = vector.shape_cast %61 : vector<1x1x128xf32> to vector<1x128xf32>
    %63 = vector.shape_cast %60 : vector<1x128xf32> to vector<1x1x128xf32>
    tpu.vector_store %arg12[%c0_37, %c0_38, %c0_39], %63 {strides = array<i32>} : memref<1x1x128xf32, #tpu.memory_space<vmem>>, vector<1x1x128xf32>,
    %c0_40 = arith.constant 0 : index
    %c0_41 = arith.constant 0 : index
    %c0_42 = arith.constant 0 : index
    %64 = vector.load %arg13[%c0_40, %c0_41, %c0_42] : memref<1x1x128xf32, #tpu.memory_space<vmem>>, vector<1x1x128xf32>
    %65 = vector.shape_cast %64 : vector<1x1x128xf32> to vector<1x128xf32>
    %66 = arith.mulf %49, %49 : vector<64x128xf32>
    %cst_43 = arith.constant dense<0.000000e+00> : vector<128xf32>
    %67 = vector.multi_reduction <add>, %66, %cst_43 [0] : vector<64x128xf32> to vector<128xf32>
    %68 = vector.shape_cast %67 : vector<128xf32> to vector<1x128xf32>
    %69 = arith.addf %65, %68 : vector<1x128xf32>
    %c0_44 = arith.constant 0 : index
    %c0_45 = arith.constant 0 : index
    %c0_46 = arith.constant 0 : index
    %70 = vector.load %arg13[%c0_44, %c0_45, %c0_46] : memref<1x1x128xf32, #tpu.memory_space<vmem>>, vector<1x1x128xf32>
    %71 = vector.shape_cast %70 : vector<1x1x128xf32> to vector<1x128xf32>
    %72 = vector.shape_cast %69 : vector<1x128xf32> to vector<1x1x128xf32>
    tpu.vector_store %arg13[%c0_44, %c0_45, %c0_46], %72 {strides = array<i32>} : memref<1x1x128xf32, #tpu.memory_space<vmem>>, vector<1x1x128xf32>,
    return
  }
  func.func @transform_0(%arg0: i32, %arg1: i32) -> (i32, i32, i32) {
    %c0_i32 = arith.constant 0 : i32
    %c0_i32_0 = arith.constant 0 : i32
    %c0_i32_1 = arith.constant 0 : i32
    return %arg0, %c0_i32, %c0_i32_0 : i32, i32, i32
  }
  func.func @transform_1(%arg0: i32, %arg1: i32) -> (i32, i32, i32) {
    %c0_i32 = arith.constant 0 : i32
    %c0_i32_0 = arith.constant 0 : i32
    %c0_i32_1 = arith.constant 0 : i32
    return %arg0, %c0_i32, %c0_i32_0 : i32, i32, i32
  }
  func.func @transform_2(%arg0: i32, %arg1: i32) -> (i32, i32, i32) {
    %c0_i32 = arith.constant 0 : i32
    %c0_i32_0 = arith.constant 0 : i32
    return %arg0, %arg1, %c0_i32 : i32, i32, i32
  }
  func.func @transform_3(%arg0: i32, %arg1: i32) -> (i32, i32, i32) {
    %c0_i32 = arith.constant 0 : i32
    %c0_i32_0 = arith.constant 0 : i32
    %c0_i32_1 = arith.constant 0 : i32
    return %arg0, %c0_i32, %c0_i32_0 : i32, i32, i32
  }
  func.func @transform_4(%arg0: i32, %arg1: i32) -> (i32, i32, i32) {
    %c0_i32 = arith.constant 0 : i32
    %c0_i32_0 = arith.constant 0 : i32
    %c0_i32_1 = arith.constant 0 : i32
    return %arg0, %c0_i32, %c0_i32_0 : i32, i32, i32
  }
  func.func @transform_5(%arg0: i32, %arg1: i32) -> (i32, i32) {
    %c0_i32 = arith.constant 0 : i32
    %c0_i32_0 = arith.constant 0 : i32
    %c0_i32_1 = arith.constant 0 : i32
    return %c0_i32, %c0_i32_0 : i32, i32
  }
  func.func @transform_6(%arg0: i32, %arg1: i32) -> (i32, i32) {
    %c0_i32 = arith.constant 0 : i32
    %c0_i32_0 = arith.constant 0 : i32
    %c0_i32_1 = arith.constant 0 : i32
    return %c0_i32, %c0_i32_0 : i32, i32
  }
  func.func @transform_7(%arg0: i32, %arg1: i32) -> (i32, i32) {
    %c0_i32 = arith.constant 0 : i32
    %c0_i32_0 = arith.constant 0 : i32
    %c0_i32_1 = arith.constant 0 : i32
    return %c0_i32, %c0_i32_0 : i32, i32
  }
  func.func @transform_8(%arg0: i32, %arg1: i32) -> (i32, i32) {
    %c0_i32 = arith.constant 0 : i32
    %c0_i32_0 = arith.constant 0 : i32
    %c0_i32_1 = arith.constant 0 : i32
    return %c0_i32, %c0_i32_0 : i32, i32
  }
  func.func @transform_9(%arg0: i32, %arg1: i32) -> (i32, i32, i32) {
    %c0_i32 = arith.constant 0 : i32
    %c0_i32_0 = arith.constant 0 : i32
    return %arg0, %arg1, %c0_i32 : i32, i32, i32
  }
  func.func @transform_10(%arg0: i32, %arg1: i32) -> (i32, i32, i32) {
    %c0_i32 = arith.constant 0 : i32
    %c0_i32_0 = arith.constant 0 : i32
    %c0_i32_1 = arith.constant 0 : i32
    return %arg0, %c0_i32, %c0_i32_0 : i32, i32, i32
  }
  func.func @transform_11(%arg0: i32, %arg1: i32) -> (i32, i32, i32) {
    %c0_i32 = arith.constant 0 : i32
    %c0_i32_0 = arith.constant 0 : i32
    %c0_i32_1 = arith.constant 0 : i32
    return %arg0, %c0_i32, %c0_i32_0 : i32, i32, i32
  }
}

module attributes {stable_mosaic.version = 11 : i64} {
  func.func @_fused_attn_kernel(%arg0: i32, %arg1: i32, %arg2: memref<1x1x128xf32, #tpu.memory_space<vmem>>, %arg3: memref<1x1x128xf32, #tpu.memory_space<vmem>>, %arg4: memref<1x64x128xf32, #tpu.memory_space<vmem>>, %arg5: memref<1x128x128xbf16, #tpu.memory_space<vmem>>, %arg6: memref<1x128x128xbf16, #tpu.memory_space<vmem>>, %arg7: memref<128x128xbf16, #tpu.memory_space<vmem>>, %arg8: memref<1x128xf32, #tpu.memory_space<vmem>>, %arg9: memref<128x128xbf16, #tpu.memory_space<vmem>>, %arg10: memref<1x128xf32, #tpu.memory_space<vmem>>, %arg11: memref<1x64x128xf32, #tpu.memory_space<vmem>>, %arg12: memref<1x1x128xf32, #tpu.memory_space<vmem>>, %arg13: memref<1x1x128xf32, #tpu.memory_space<vmem>>, %arg14: memref<64x128xf32, #tpu.memory_space<vmem>>) attributes {dimension_semantics = [#tpu.dimension_semantics<parallel>, #tpu.dimension_semantics<arbitrary>], iteration_bounds = array<i64: 2, 1>, scalar_prefetch = 0 : i64, scratch_operands = 1 : i64, tpu.core_type = #tpu.core_type<tc>, window_params = [{transform_indices = @transform_0, window_bounds = array<i64: 1, 1, 128>}, {transform_indices = @transform_1, window_bounds = array<i64: 1, 1, 128>}, {transform_indices = @transform_2, window_bounds = array<i64: 1, 64, 128>}, {transform_indices = @transform_3, window_bounds = array<i64: 1, 128, 128>}, {transform_indices = @transform_4, window_bounds = array<i64: 1, 128, 128>}, {pipeline_mode = #tpu.pipeline_mode<synchronous>, transform_indices = @transform_5, window_bounds = array<i64: 128, 128>}, {pipeline_mode = #tpu.pipeline_mode<synchronous>, transform_indices = @transform_6, window_bounds = array<i64: 1, 128>}, {pipeline_mode = #tpu.pipeline_mode<synchronous>, transform_indices = @transform_7, window_bounds = array<i64: 128, 128>}, {pipeline_mode = #tpu.pipeline_mode<synchronous>, transform_indices = @transform_8, window_bounds = array<i64: 1, 128>}, {transform_indices = @transform_9, window_bounds = array<i64: 1, 64, 128>}, {transform_indices = @transform_10, window_bounds = array<i64: 1, 1, 128>}, {transform_indices = @transform_11, window_bounds = array<i64: 1, 1, 128>}]} {
    %c0 = arith.constant 0 : index
    %c0_0 = arith.constant 0 : index
    %c0_1 = arith.constant 0 : index
    %0 = vector.load %arg4[%c0, %c0_0, %c0_1] : memref<1x64x128xf32, #tpu.memory_space<vmem>>, vector<1x64x128xf32>
    %1 = vector.shape_cast %0 : vector<1x64x128xf32> to vector<64x128xf32>
    %c0_2 = arith.constant 0 : index
    %c0_3 = arith.constant 0 : index
    %c0_4 = arith.constant 0 : index
    %2 = vector.load %arg2[%c0_2, %c0_3, %c0_4] : memref<1x1x128xf32, #tpu.memory_space<vmem>>, vector<1x1x128xf32>
    %3 = vector.shape_cast %2 : vector<1x1x128xf32> to vector<1x128xf32>
    %4 = vector.broadcast %3 : vector<1x128xf32> to vector<64x128xf32>
    %5 = arith.mulf %1, %4 : vector<64x128xf32>
    %c0_5 = arith.constant 0 : index
    %c0_6 = arith.constant 0 : index
    %c0_7 = arith.constant 0 : index
    %6 = vector.load %arg3[%c0_5, %c0_6, %c0_7] : memref<1x1x128xf32, #tpu.memory_space<vmem>>, vector<1x1x128xf32>
    %7 = vector.shape_cast %6 : vector<1x1x128xf32> to vector<1x128xf32>
    %8 = vector.broadcast %7 : vector<1x128xf32> to vector<64x128xf32>
    %9 = arith.addf %5, %8 : vector<64x128xf32>
    %10 = arith.truncf %9 : vector<64x128xf32> to vector<64x128xbf16>
    %c0_8 = arith.constant 0 : index
    %c0_9 = arith.constant 0 : index
    %11 = vector.load %arg7[%c0_8, %c0_9] : memref<128x128xbf16, #tpu.memory_space<vmem>>, vector<128x128xbf16>
    %cst = arith.constant dense<0.000000e+00> : vector<64x128xf32>
    %12 = tpu.matmul %10, %11, %cst {dimension_numbers = #tpu.dot_dimension_numbers<[1], [0], [0], [1], [0, 0, 1, 1], [], []>} : vector<64x128xbf16>, vector<128x128xbf16>, vector<64x128xf32> -> vector<64x128xf32>
    %c0_10 = arith.constant 0 : index
    %c0_11 = arith.constant 0 : index
    %13 = vector.load %arg8[%c0_10, %c0_11] : memref<1x128xf32, #tpu.memory_space<vmem>>, vector<1x128xf32>
    %14 = vector.broadcast %13 : vector<1x128xf32> to vector<64x128xf32>
    %15 = arith.addf %12, %14 : vector<64x128xf32>
    %cst_12 = arith.constant 0.0883883461 : f32
    %16 = vector.broadcast %cst_12 : f32 to vector<64x128xf32>
    %17 = arith.mulf %15, %16 : vector<64x128xf32>
    %18 = tpu.iota {dimensions = array<i32: 1>} : vector<1x128xi32>
    %c8_i32 = arith.constant 8 : i32
    %19 = vector.broadcast %c8_i32 : i32 to vector<1x128xi32>
    %20 = arith.cmpi slt, %18, %19 : vector<1x128xi32>
    %21 = arith.truncf %17 : vector<64x128xf32> to vector<64x128xbf16>
    %c0_13 = arith.constant 0 : index
    %c0_14 = arith.constant 0 : index
    %c0_15 = arith.constant 0 : index
    %22 = vector.load %arg5[%c0_13, %c0_14, %c0_15] : memref<1x128x128xbf16, #tpu.memory_space<vmem>>, vector<1x128x128xbf16>
    %23 = vector.shape_cast %22 : vector<1x128x128xbf16> to vector<128x128xbf16>
    %cst_16 = arith.constant dense<0.000000e+00> : vector<64x128xf32>
    %24 = tpu.matmul %21, %23, %cst_16 {dimension_numbers = #tpu.dot_dimension_numbers<[1], [1], [0], [0], [0, 0, 1, 0], [], []>} : vector<64x128xbf16>, vector<128x128xbf16>, vector<64x128xf32> -> vector<64x128xf32>
    %cst_17 = arith.constant -1.000000e+30 : f32
    %25 = vector.shape_cast %20 : vector<1x128xi1> to vector<1x128xi1>
    %26 = vector.broadcast %25 : vector<1x128xi1> to vector<64x128xi1>
    %27 = vector.broadcast %cst_17 : f32 to vector<64x128xf32>
    %28 = arith.select %26, %24, %27 : vector<64x128xi1>, vector<64x128xf32>
    %cst_18 = arith.constant dense<0xFF800000> : vector<64xf32>
    %29 = vector.multi_reduction <maximumf>, %28, %cst_18 [1] : vector<64x128xf32> to vector<64xf32>
    %30 = vector.shape_cast %29 : vector<64xf32> to vector<64x1xf32>
    %31 = vector.broadcast %30 : vector<64x1xf32> to vector<64x128xf32>
    %32 = arith.subf %28, %31 : vector<64x128xf32>
    %33 = math.exp %32 : vector<64x128xf32>
    %cst_19 = arith.constant dense<0.000000e+00> : vector<64xf32>
    %34 = vector.multi_reduction <add>, %33, %cst_19 [1] : vector<64x128xf32> to vector<64xf32>
    %35 = vector.shape_cast %34 : vector<64xf32> to vector<64x1xf32>
    %36 = arith.truncf %33 : vector<64x128xf32> to vector<64x128xbf16>
    %c0_20 = arith.constant 0 : index
    %c0_21 = arith.constant 0 : index
    %c0_22 = arith.constant 0 : index
    %37 = vector.load %arg6[%c0_20, %c0_21, %c0_22] : memref<1x128x128xbf16, #tpu.memory_space<vmem>>, vector<1x128x128xbf16>
    %38 = vector.shape_cast %37 : vector<1x128x128xbf16> to vector<128x128xbf16>
    %cst_23 = arith.constant dense<0.000000e+00> : vector<64x128xf32>
    %39 = tpu.matmul %36, %38, %cst_23 {dimension_numbers = #tpu.dot_dimension_numbers<[1], [0], [0], [1], [0, 0, 1, 1], [], []>} : vector<64x128xbf16>, vector<128x128xbf16>, vector<64x128xf32> -> vector<64x128xf32>
    %40 = tpu.reciprocal %35 {approx = true} : vector<64x1xf32> -> vector<64x1xf32>
    %41 = vector.broadcast %40 : vector<64x1xf32> to vector<64x128xf32>
    %42 = arith.mulf %39, %41 : vector<64x128xf32>
    %43 = arith.truncf %42 : vector<64x128xf32> to vector<64x128xbf16>
    %c0_24 = arith.constant 0 : index
    %c0_25 = arith.constant 0 : index
    %44 = vector.load %arg9[%c0_24, %c0_25] : memref<128x128xbf16, #tpu.memory_space<vmem>>, vector<128x128xbf16>
    %cst_26 = arith.constant dense<0.000000e+00> : vector<64x128xf32>
    %45 = tpu.matmul %43, %44, %cst_26 {dimension_numbers = #tpu.dot_dimension_numbers<[1], [0], [0], [1], [0, 0, 1, 1], [], []>} : vector<64x128xbf16>, vector<128x128xbf16>, vector<64x128xf32> -> vector<64x128xf32>
    %46 = arith.addf %1, %45 : vector<64x128xf32>
    %c0_27 = arith.constant 0 : index
    %c0_28 = arith.constant 0 : index
    %47 = vector.load %arg10[%c0_27, %c0_28] : memref<1x128xf32, #tpu.memory_space<vmem>>, vector<1x128xf32>
    %48 = vector.broadcast %47 : vector<1x128xf32> to vector<64x128xf32>
    %49 = arith.addf %46, %48 : vector<64x128xf32>
    %c0_29 = arith.constant 0 : index
    %c0_30 = arith.constant 0 : index
    %c0_31 = arith.constant 0 : index
    %50 = vector.load %arg11[%c0_29, %c0_30, %c0_31] : memref<1x64x128xf32, #tpu.memory_space<vmem>>, vector<1x64x128xf32>
    %51 = vector.shape_cast %50 : vector<1x64x128xf32> to vector<64x128xf32>
    %52 = vector.shape_cast %49 : vector<64x128xf32> to vector<1x64x128xf32>
    tpu.vector_store %arg11[%c0_29, %c0_30, %c0_31], %52 {strides = array<i32>} : memref<1x64x128xf32, #tpu.memory_space<vmem>>, vector<1x64x128xf32>,
    %c0_i32 = arith.constant 0 : i32
    %53 = arith.cmpi eq, %arg1, %c0_i32 : i32
    %54 = arith.extui %53 : i1 to i32
    %c0_i32_32 = arith.constant 0 : i32
    %55 = arith.cmpi ne, %54, %c0_i32_32 : i32
    scf.if %55 {
      %cst_47 = arith.constant 0.000000e+00 : f32
      %73 = vector.broadcast %cst_47 : f32 to vector<1x1x128xf32>
      %c0_48 = arith.constant 0 : index
      %c0_49 = arith.constant 0 : index
      %c0_50 = arith.constant 0 : index
      %74 = vector.load %arg12[%c0_48, %c0_49, %c0_50] : memref<1x1x128xf32, #tpu.memory_space<vmem>>, vector<1x1x128xf32>
      tpu.vector_store %arg12[%c0_48, %c0_49, %c0_50], %73 {strides = array<i32>} : memref<1x1x128xf32, #tpu.memory_space<vmem>>, vector<1x1x128xf32>,
      %cst_51 = arith.constant 0.000000e+00 : f32
      %75 = vector.broadcast %cst_51 : f32 to vector<1x1x128xf32>
      %c0_52 = arith.constant 0 : index
      %c0_53 = arith.constant 0 : index
      %c0_54 = arith.constant 0 : index
      %76 = vector.load %arg13[%c0_52, %c0_53, %c0_54] : memref<1x1x128xf32, #tpu.memory_space<vmem>>, vector<1x1x128xf32>
      tpu.vector_store %arg13[%c0_52, %c0_53, %c0_54], %75 {strides = array<i32>} : memref<1x1x128xf32, #tpu.memory_space<vmem>>, vector<1x1x128xf32>,
    } else {
    }
    %c0_33 = arith.constant 0 : index
    %c0_34 = arith.constant 0 : index
    %c0_35 = arith.constant 0 : index
    %56 = vector.load %arg12[%c0_33, %c0_34, %c0_35] : memref<1x1x128xf32, #tpu.memory_space<vmem>>, vector<1x1x128xf32>
    %57 = vector.shape_cast %56 : vector<1x1x128xf32> to vector<1x128xf32>
    %cst_36 = arith.constant dense<0.000000e+00> : vector<128xf32>
    %58 = vector.multi_reduction <add>, %49, %cst_36 [0] : vector<64x128xf32> to vector<128xf32>
    %59 = vector.shape_cast %58 : vector<128xf32> to vector<1x128xf32>
    %60 = arith.addf %57, %59 : vector<1x128xf32>
    %c0_37 = arith.constant 0 : index
    %c0_38 = arith.constant 0 : index
    %c0_39 = arith.constant 0 : index
    %61 = vector.load %arg12[%c0_37, %c0_38, %c0_39] : memref<1x1x128xf32, #tpu.memory_space<vmem>>, vector<1x1x128xf32>
    %62 = vector.shape_cast %61 : vector<1x1x128xf32> to vector<1x128xf32>
    %63 = vector.shape_cast %60 : vector<1x128xf32> to vector<1x1x128xf32>
    tpu.vector_store %arg12[%c0_37, %c0_38, %c0_39], %63 {strides = array<i32>} : memref<1x1x128xf32, #tpu.memory_space<vmem>>, vector<1x1x128xf32>,
    %c0_40 = arith.constant 0 : index
    %c0_41 = arith.constant 0 : index
    %c0_42 = arith.constant 0 : index
    %64 = vector.load %arg13[%c0_40, %c0_41, %c0_42] : memref<1x1x128xf32, #tpu.memory_space<vmem>>, vector<1x1x128xf32>
    %65 = vector.shape_cast %64 : vector<1x1x128xf32> to vector<1x128xf32>
    %66 = arith.mulf %49, %49 : vector<64x128xf32>
    %cst_43 = arith.constant dense<0.000000e+00> : vector<128xf32>
    %67 = vector.multi_reduction <add>, %66, %cst_43 [0] : vector<64x128xf32> to vector<128xf32>
    %68 = vector.shape_cast %67 : vector<128xf32> to vector<1x128xf32>
    %69 = arith.addf %65, %68 : vector<1x128xf32>
    %c0_44 = arith.constant 0 : index
    %c0_45 = arith.constant 0 : index
    %c0_46 = arith.constant 0 : index
    %70 = vector.load %arg13[%c0_44, %c0_45, %c0_46] : memref<1x1x128xf32, #tpu.memory_space<vmem>>, vector<1x1x128xf32>
    %71 = vector.shape_cast %70 : vector<1x1x128xf32> to vector<1x128xf32>
    %72 = vector.shape_cast %69 : vector<1x128xf32> to vector<1x1x128xf32>
    tpu.vector_store %arg13[%c0_44, %c0_45, %c0_46], %72 {strides = array<i32>} : memref<1x1x128xf32, #tpu.memory_space<vmem>>, vector<1x1x128xf32>,
    return
  }
  func.func @transform_0(%arg0: i32, %arg1: i32) -> (i32, i32, i32) {
    %c0_i32 = arith.constant 0 : i32
    %c0_i32_0 = arith.constant 0 : i32
    %c0_i32_1 = arith.constant 0 : i32
    return %arg0, %c0_i32, %c0_i32_0 : i32, i32, i32
  }
  func.func @transform_1(%arg0: i32, %arg1: i32) -> (i32, i32, i32) {
    %c0_i32 = arith.constant 0 : i32
    %c0_i32_0 = arith.constant 0 : i32
    %c0_i32_1 = arith.constant 0 : i32
    return %arg0, %c0_i32, %c0_i32_0 : i32, i32, i32
  }
  func.func @transform_2(%arg0: i32, %arg1: i32) -> (i32, i32, i32) {
    %c0_i32 = arith.constant 0 : i32
    %c0_i32_0 = arith.constant 0 : i32
    return %arg0, %arg1, %c0_i32 : i32, i32, i32
  }
  func.func @transform_3(%arg0: i32, %arg1: i32) -> (i32, i32, i32) {
    %c0_i32 = arith.constant 0 : i32
    %c0_i32_0 = arith.constant 0 : i32
    %c0_i32_1 = arith.constant 0 : i32
    return %arg0, %c0_i32, %c0_i32_0 : i32, i32, i32
  }
  func.func @transform_4(%arg0: i32, %arg1: i32) -> (i32, i32, i32) {
    %c0_i32 = arith.constant 0 : i32
    %c0_i32_0 = arith.constant 0 : i32
    %c0_i32_1 = arith.constant 0 : i32
    return %arg0, %c0_i32, %c0_i32_0 : i32, i32, i32
  }
  func.func @transform_5(%arg0: i32, %arg1: i32) -> (i32, i32) {
    %c0_i32 = arith.constant 0 : i32
    %c0_i32_0 = arith.constant 0 : i32
    %c0_i32_1 = arith.constant 0 : i32
    return %c0_i32, %c0_i32_0 : i32, i32
  }
  func.func @transform_6(%arg0: i32, %arg1: i32) -> (i32, i32) {
    %c0_i32 = arith.constant 0 : i32
    %c0_i32_0 = arith.constant 0 : i32
    %c0_i32_1 = arith.constant 0 : i32
    return %c0_i32, %c0_i32_0 : i32, i32
  }
  func.func @transform_7(%arg0: i32, %arg1: i32) -> (i32, i32) {
    %c0_i32 = arith.constant 0 : i32
    %c0_i32_0 = arith.constant 0 : i32
    %c0_i32_1 = arith.constant 0 : i32
    return %c0_i32, %c0_i32_0 : i32, i32
  }
  func.func @transform_8(%arg0: i32, %arg1: i32) -> (i32, i32) {
    %c0_i32 = arith.constant 0 : i32
    %c0_i32_0 = arith.constant 0 : i32
    %c0_i32_1 = arith.constant 0 : i32
    return %c0_i32, %c0_i32_0 : i32, i32
  }
  func.func @transform_9(%arg0: i32, %arg1: i32) -> (i32, i32, i32) {
    %c0_i32 = arith.constant 0 : i32
    %c0_i32_0 = arith.constant 0 : i32
    return %arg0, %arg1, %c0_i32 : i32, i32, i32
  }
  func.func @transform_10(%arg0: i32, %arg1: i32) -> (i32, i32, i32) {
    %c0_i32 = arith.constant 0 : i32
    %c0_i32_0 = arith.constant 0 : i32
    %c0_i32_1 = arith.constant 0 : i32
    return %arg0, %c0_i32, %c0_i32_0 : i32, i32, i32
  }
  func.func @transform_11(%arg0: i32, %arg1: i32) -> (i32, i32, i32) {
    %c0_i32 = arith.constant 0 : i32
    %c0_i32_0 = arith.constant 0 : i32
    %c0_i32_1 = arith.constant 0 : i32
    return %arg0, %c0_i32, %c0_i32_0 : i32, i32, i32
  }
}

</mosaic_0001>

<bundles_post_ra>
// kernel: conditional_unet_decoder3d.5
= control target key start
LH: loop header
LB: loop body
LE: loop exit
PB: predicated region body
PF: predicated region fallthrough
CT: control target
= control target key end

     0   :  { %8 = vsyncpa [#allocation3], 0  ;;  %s613_s0 = inlined_call_operand.hbm [shape: f32[2,64,128], index: 0, kind: input, shape index: {}]   ;;  %s614_s1 = inlined_call_operand.vmem [shape: f32[2,1,128], index: 1, kind: output, shape index: {0}]   ;;  %s615_s2 = inlined_call_operand.vmem [shape: f32[2,1,128], index: 2, kind: output, shape index: {1}]  }
   0x1   :  { %10 = vsyncpa [#allocation3 + $0x1], 0  ;;  %s504_s9 = smov 0   ;;  %s506_s10 = smov 0  }
   0x2   :  { %s508_s11 = smov 0   ;;  %s510_s12 = smov 0  }
   0x3   :  { %s512_s13 = smov 0   ;;  %s514_s14 = smov 0  }
   0x4 LB: > { %s335_s15 = sadd.s32 4294967295, %s483_s14   ;;  %s28_s16 = sadd.s32 1, %s479_s13  ;;  %s483_s14 = sphi %s514_s14, %s16_s14   ;;  %s479_s13 = sphi %s512_s13, %s623_s13   ;;  %s475_s12 = sphi %s510_s12, %s622_s12   ;;  %s471_s11 = sphi %s508_s11, %s621_s11   ;;  %s467_s10 = sphi %s506_s10, %s620_s10   ;;  %s463_s9 = sphi %s504_s9, %s619_s9  }
   0x5   : > { %p30_p0 = scmp.ge.s32.totalorder %s28_s16, 2  ;;  %s37_s17 = sadd.s32 1, %s471_s11 }
   0x6   : > { %p44_p1 = scmp.ne.s32.totalorder %s471_s11, %s467_s10  ;;  %p45_p2 = scmp.eq.s32.totalorder %s483_s14, 0 }
   0x7   : > { %s625_s16 = smov (%p30_p0, %s28_s16), 0  ;;  %p50_p4 = scmp.ne.s32.totalorder %s467_s10, %s463_s9 }
   0x8   : > { %p540_p3 = por %p45_p2, %p44_p1  ;;  %s32_s19 = ssub.s32 %s479_s13, %s625_s16 }
   0x9   : > { %p51_p5 = scmp.eq.s32.totalorder %s335_s15, 0  ;;  %p35_p6 = scmp.eq.s32.totalorder %s32_s19, 0 }
   0xa   : > { %p353_p8 = scmp.lt.s32.totalorder %s483_s14, 2  ;;  %s126_s22 = sand.u32 1, %s471_s11  }
   0xb   : > { %p547_p7 = por %p51_p5, %p50_p4  ;;  %s346_s23 = sshll.u32 %s479_s13, 10 }
   0xc   : > { %s553_s21 = scalar_select %p35_p6, %s471_s11, %s37_s17  }
   0xd   : > { %s339_s24 = sshll.u32 %s126_s22, 6  ;;  %s138_s27 = scalar_lea.hbm %s613_s0, %s346_s23 }
   0xe   : > { %s130_s28 = scalar_lea.vmem [#allocation2], %s339_s24  ;;  %p562_p9 = pnand %p353_p8, %p540_p3 }
   0xf   : > { %s139_s29 = sshll.u32 %s130_s28, 4  ;;  %s127_s3 = scalar_lea.sflag [#allocation3], %s126_s22  ;;  %s140_s29 = int_to_ptr.vmem [resolvable:$true] %s139_s29 }
  0x10   : > { %p407_p10 = pneg %p562_p9  ;;  %s418_s4 = scalar_lea.vmem %s140_s29, 1024 }
  0x11   : > { %p419_p11 = scmp.ne.s32.totalorder %s140_s29, %s418_s4  ;;  %s485_s5 = smov [#allocation2]  }
  0x12   : > { %s423_s6 = sshll.u32 %s485_s5, 4  ;;  %s424_s6 = int_to_ptr.vmem [resolvable:$false] %s423_s6 }
  0x13   : > { %p421_p12 = pnand %p419_p11, %p407_p10  ;;  %s425_s7 = scalar_lea.vmem %s424_s6, 2048 }
  0x14   : > { %p426_p0 = scmp.lt.s32.totalorder %s140_s29, %s424_s6  ;;  %p427_p1 = scmp.lt.s32.totalorder %s425_s7, %s418_s4 }
  0x15   : > { %p422_p13 = pneg %p421_p12 }
  0x16   : > { %p428_p2 = por %p427_p1, %p426_p0 }
  0x18   : > { %p429_p3 = pnand %p428_p2, %p422_p13 }
  0x1a   : > { %432 = shalt.err (!%p429_p3)
}
  0x1b   : > { %s486_s8 = smov 128   ;;  %s487_s9 = smov 8  }
  0x1c   : > { %352 = dma.hbm_to_vmem [thread:$0]  (!%p562_p9), %s138_s27, 1024, %s140_s29, %s127_s3, %s486_s8, %s486_s8, %s487_s9  }
  0x1d   : > { %p342_p4 = scmp.ge.s32.totalorder %s483_s14, 1  ;;  %p147_p5 = scmp.lt.s32.totalorder %s483_s14, 3 }
  0x1f   : > { %p148_p6 = pnand %p342_p4, %p147_p5 }
  0x20   : > { %s153_s15 = sand.u32 (!%p148_p6), 1, %s467_s10  }
  0x21   : > { %151 = sbr.rel (%p148_p6) target bundleno = 71 (0x47), region = 24  ;;  %s343_s17 = sshll.u32 (!%p148_p6), %s153_s15, 6 }
  0x22   : > { %s154_s18 = scalar_lea.sflag (!%p148_p6), [#allocation3], %s153_s15  ;;  %s157_s19 = scalar_lea.vmem (!%p148_p6), [#allocation2], %s343_s17 }
  0x26   : > { %458 = dma.done.wait (%p547_p7), %s154_s18, 1024  }
  0x27   : > { %460 = vsyncadd (%p547_p7), %s154_s18, 4294966272  ;;  %p180_p8 = scmp.lt.s32.totalorder %s475_s12, 1  ;;  %v488_v0 = vmov 0.0   ;;  %v186_v1 = vld [vmem:[%s157_s19] sm:$0xff]  ;;  %v187_v2 = vld [vmem:[%s157_s19 + $0x8] sm:$0xff] }
  0x28   : > { %v188_v3 = vld [vmem:[%s157_s19 + $0x10] sm:$0xff]  ;;  %v189_v4 = vld [vmem:[%s157_s19 + $0x18] sm:$0xff]  ;;  %v201_v5 = vadd.f32 %v187_v2, %v186_v1  ;;  %v217_v6 = vmul.f32 %v186_v1, %v186_v1  ;;  %v218_v7 = vmul.f32 %v187_v2, %v187_v2  ;;  %v190_v9 = vld [vmem:[%s157_s19 + $0x20] sm:$0xff] }
  0x29   : > { %s627_s12 = smov (!%p180_p8, %s475_s12), 1  ;;  %v219_v8 = vmul.f32 %v188_v3, %v188_v3  ;;  %v220_v11 = vmul.f32 %v189_v4, %v189_v4  ;;  %v191_v13 = vld [vmem:[%s157_s19 + $0x28] sm:$0xff]  ;;  %v221_v15 = vmul.f32 %v190_v9, %v190_v9  ;;  %v192_v17 = vld [vmem:[%s157_s19 + $0x30] sm:$0xff]  ;;  %v193_v21 = vld [vmem:[%s157_s19 + $0x38] sm:$0xff] }
  0x2a   : > { %s582_s24 = scalar_lea.vmem %s614_s1, %s627_s12  ;;  %s587_s27 = scalar_lea.vmem %s615_s2, %s627_s12  ;;  %v202_v10 = vadd.f32 %v201_v5, %v188_v3  ;;  %v225_v12 = vadd.f32 %v218_v7, %v217_v6  ;;  %v222_v19 = vmul.f32 %v191_v13, %v191_v13  ;;  %v223_v23 = vmul.f32 %v192_v17, %v192_v17 }
  0x2b   : > { %198 = vst [vmem:[%s582_s24] sm:$0x1] %v488_v0  ;;  %199 = vst [vmem:[%s587_s27] sm:$0x1] %v488_v0  ;;  %v224_v26 = vmul.f32 %v193_v21, %v193_v21 }
  0x2c   : > { %v203_v14 = vadd.f32 %v202_v10, %v189_v4  ;;  %v226_v16 = vadd.f32 %v225_v12, %v219_v8 }
  0x2e   : > { %v204_v18 = vadd.f32 %v203_v14, %v190_v9  ;;  %v227_v20 = vadd.f32 %v226_v16, %v220_v11 }
  0x30   : > { %v205_v22 = vadd.f32 %v204_v18, %v191_v13  ;;  %v228_v24 = vadd.f32 %v227_v20, %v221_v15 }
  0x32   : > { %v206_v25 = vadd.f32 %v205_v22, %v192_v17  ;;  %v229_v27 = vadd.f32 %v228_v24, %v222_v19  ;;  %v200_v40 = vld [vmem:[%s582_s24] sm:$0x1] }
  0x33   : > { %v216_v43 = vld [vmem:[%s587_s27] sm:$0x1] }
  0x34   : > { %v207_v28 = vadd.f32 %v206_v25, %v193_v21  ;;  %v230_v29 = vadd.f32 %v229_v27, %v223_v23 }
  0x36   : > { %v208_v30 = vrot.slane %v207_v28, 4  ;;  %v231_v31 = vadd.f32 %v230_v29, %v224_v26 }
  0x38   : > { %v209_v32 = vadd.f32 %v208_v30, %v207_v28  ;;  %v232_v33 = vrot.slane %v231_v31, 4 }
  0x3a   : > { %v210_v34 = vrot.slane %v209_v32, 2  ;;  %v233_v35 = vadd.f32 %v232_v33, %v231_v31 }
  0x3c   : > { %v211_v36 = vadd.f32 %v210_v34, %v209_v32  ;;  %v234_v37 = vrot.slane %v233_v35, 2 }
  0x3e   : > { %v212_v38 = vrot.slane %v211_v36, 1  ;;  %v235_v39 = vadd.f32 %v234_v37, %v233_v35 }
  0x40   : > { %v213_v41 = vadd.f32 %v212_v38, %v211_v36  ;;  %v236_v42 = vrot.slane %v235_v39, 1 }
  0x42   : > { %v214_v44 = vadd.f32 %v213_v41, %v200_v40  ;;  %v237_v45 = vadd.f32 %v236_v42, %v235_v39 }
  0x44   : > { %215 = vst [vmem:[%s582_s24] sm:$0x1] %v214_v44  ;;  %v238_v46 = vadd.f32 %v237_v45, %v216_v43 }
  0x46   : > { %239 = vst [vmem:[%s587_s27] sm:$0x1] %v238_v46 }
  0x47 PF: > { %s16_s14 = sadd.s32 1, %s483_s14   ;;  %s619_s9 = smov %s467_s10 }
  0x48   : > { %p13_p7 = scmp.ge.s32.totalorder %s16_s14, 4   ;;  %s620_s10 = smov %s471_s11 }
  0x49   : > { %s621_s11 = smov %s553_s21  ;;  %s622_s12 = smov %s479_s13 }
  0x4a   : > { %s623_s13 = smov %s625_s16  ;;  %15 = sbr.rel (!%p13_p7) target bundleno = 4 (0x4), region = 80 }
  0x4f   :  { %269 = vsyncpa [#allocation3], 1 }
  0x50   :  { %271 = vsyncpa [#allocation3 + $0x1], 1 }

// kernel: conditional_unet_decoder3d.6
= control target key start
LH: loop header
LB: loop body
LE: loop exit
PB: predicated region body
PF: predicated region fallthrough
CT: control target
= control target key end

     0   :  { %s757_s21 = smov 0   ;;  %s857_s0 = inlined_call_operand.vmem [shape: f32[2,8,128], index: 0, kind: input, shape index: {}]   ;;  %s858_s1 = inlined_call_operand.vmem [shape: bf16[128,128], index: 1, kind: input, shape index: {}]   ;;  %s859_s2 = inlined_call_operand.vmem [shape: f32[1,128], index: 2, kind: input, shape index: {}]   ;;  %s860_s3 = inlined_call_operand.vmem [shape: bf16[128,128], index: 3, kind: input, shape index: {}]   ;;  %s861_s4 = inlined_call_operand.vmem [shape: f32[1,128], index: 4, kind: input, shape index: {}]   ;;  %s862_s5 = inlined_call_operand.vmem [shape: bf16[2,128,128], index: 5, kind: output, shape index: {0}]   ;;  %s863_s6 = inlined_call_operand.vmem [shape: bf16[2,128,128], index: 6, kind: output, shape index: {1}]  }
   0x1 LB: > { %s594_s22 = sadd.s32 4294967295, %s717_s21   ;;  %p598_p0 = scmp.ge.s32.totalorder %s717_s21, 1  ;;  %s717_s21 = sphi %s757_s21, %s17_s21  }
   0x2   : > { %p214_p1 = scmp.lt.s32.totalorder %s717_s21, 3 }
   0x4   : > { %p215_p2 = pnand %p598_p0, %p214_p1 }
   0x5   : > { %p248_p3 = scmp.lt.s32.totalorder (!%p215_p2), %s594_s22, 1 }
   0x6   : > { %218 = sbr.rel (%p215_p2) target bundleno = 244 (0xf4), region = 40 }
   0xb   : > { %v695_v0 = vld [vmem:[%s858_s1 + $0x38] sm:$0xff]   ;;  %v719_v1 = vmov 0.0   ;;  %v697_v3 = vld [vmem:[%s858_s1 + $0x30] sm:$0xff]   ;;  %vm720_vm0 = vmmov 0   ;;  %v699_v5 = vld [vmem:[%s858_s1 + $0x28] sm:$0xff]   ;;  %s865_s22 = smov (!%p248_p3, %s594_s22), 1 }
   0xc   : > { %644 = vmatprep.subr.bf16.mxu0 %v719_v1  ;;  %664 = vmatprep.subr.bf16.mxu1 %v719_v1  ;;  %v696_v2 = vld [vmem:[%s860_s3 + $0x38] sm:$0xff]   ;;  %v698_v4 = vld [vmem:[%s860_s3 + $0x30] sm:$0xff]   ;;  %v700_v6 = vld [vmem:[%s860_s3 + $0x28] sm:$0xff]   ;;  %s599_s25 = sshll.u32 %s865_s22, 3  ;;  %s624_s13 = sshll.u32 %s865_s22, 6  ;;  %v721_v19 = vmov 0  }
   0xd   : > { %645 = vmatpush3.bf16.msra.mxu0 %v695_v0  ;;  %660 = vmatprep.mubr.msk.bf16.mxu0 %vm720_vm0, %v719_v1  ;;  %v701_v7 = vld [vmem:[%s858_s1 + $0x20] sm:$0xff]   ;;  %v703_v9 = vld [vmem:[%s858_s1 + $0x18] sm:$0xff]   ;;  %v705_v11 = vld [vmem:[%s858_s1 + $0x10] sm:$0xff]   ;;  %s251_s8 = scalar_lea.vmem %s857_s0, %s599_s25  ;;  %s827_s16 = scalar_lea.vmem %s863_s6, %s624_s13 }
   0xe   : > { %665 = vmatpush3.bf16.msra.mxu1 %v696_v2  ;;  %646 = vmatprep.subr.bf16.mxu0 %v719_v1  ;;  %v702_v8 = vld [vmem:[%s860_s3 + $0x20] sm:$0xff]   ;;  %v704_v10 = vld [vmem:[%s860_s3 + $0x18] sm:$0xff]   ;;  %v706_v12 = vld [vmem:[%s860_s3 + $0x10] sm:$0xff]   ;;  %487 = vst [vmem:[%s827_s16 + $0x4] sm:$0xf] %v721_v19  ;;  %s256_s24 = scalar_lea.vmem %s862_s5, %s624_s13 }
   0xf   : > { %666 = vmatprep.subr.bf16.mxu1 %v719_v1  ;;  %680 = vmatprep.mubr.msk.bf16.mxu1 %vm720_vm0, %v719_v1  ;;  %v707_v13 = vld [vmem:[%s858_s1 + $0x8] sm:$0xff]   ;;  %v709_v15 = vld [vmem:[%s858_s1] sm:$0xff]   ;;  %488 = vst [vmem:[%s827_s16 + $0x8] sm:$0xf] %v721_v19  ;;  %489 = vst [vmem:[%s827_s16 + $0xc] sm:$0xf] %v721_v19 }
  0x10   : > { %v708_v14 = vld [vmem:[%s860_s3 + $0x8] sm:$0xff]   ;;  %v263_v16 = vld [vmem:[%s251_s8] sm:$0xff]  ;;  %490 = vst [vmem:[%s827_s16 + $0x10] sm:$0xf] %v721_v19  ;;  %491 = vst [vmem:[%s827_s16 + $0x14] sm:$0xf] %v721_v19 }
  0x11   : > { %647 = vmatpush3.bf16.msra.mxu0 %v697_v3  ;;  %v710_v17 = vld [vmem:[%s860_s3] sm:$0xff]   ;;  %v264_v18 = vpack.c.bf16 %v263_v16, %v263_v16  ;;  %492 = vst [vmem:[%s827_s16 + $0x18] sm:$0xf] %v721_v19  ;;  %493 = vst [vmem:[%s827_s16 + $0x1c] sm:$0xf] %v721_v19 }
  0x12   : > { %667 = vmatpush3.bf16.msra.mxu1 %v698_v4  ;;  %648 = vmatprep.subr.bf16.mxu0 %v719_v1  ;;  %494 = vst [vmem:[%s827_s16 + $0x20] sm:$0xf] %v721_v19  ;;  %495 = vst [vmem:[%s827_s16 + $0x24] sm:$0xf] %v721_v19  ;;  %v604_v20 = vld [vmem:[%s859_s2] ss:$0 sm:$0xff] }
  0x13   : > { %668 = vmatprep.subr.bf16.mxu1 %v719_v1  ;;  %496 = vst [vmem:[%s827_s16 + $0x28] sm:$0xf] %v721_v19  ;;  %497 = vst [vmem:[%s827_s16 + $0x2c] sm:$0xf] %v721_v19  ;;  %v613_v21 = vld [vmem:[%s861_s4] ss:$0 sm:$0xff] }
  0x14   : > { %498 = vst [vmem:[%s827_s16 + $0x30] sm:$0xf] %v721_v19  ;;  %499 = vst [vmem:[%s827_s16 + $0x34] sm:$0xf] %v721_v19 }
  0x15   : > { %649 = vmatpush3.bf16.msra.mxu0 %v699_v5  ;;  %500 = vst [vmem:[%s827_s16 + $0x38] sm:$0xf] %v721_v19  ;;  %501 = vst [vmem:[%s827_s16 + $0x3c] sm:$0xf] %v721_v19 }
  0x16   : > { %669 = vmatpush3.bf16.msra.mxu1 %v700_v6  ;;  %650 = vmatprep.subr.bf16.mxu0 %v719_v1 }
  0x17   : > { %670 = vmatprep.subr.bf16.mxu1 %v719_v1 }
  0x19   : > { %651 = vmatpush3.bf16.msra.mxu0 %v701_v7 }
  0x1a   : > { %671 = vmatpush3.bf16.msra.mxu1 %v702_v8  ;;  %652 = vmatprep.subr.bf16.mxu0 %v719_v1 }
  0x1b   : > { %672 = vmatprep.subr.bf16.mxu1 %v719_v1 }
  0x1d   : > { %653 = vmatpush3.bf16.msra.mxu0 %v703_v9 }
  0x1e   : > { %673 = vmatpush3.bf16.msra.mxu1 %v704_v10  ;;  %654 = vmatprep.subr.bf16.mxu0 %v719_v1 }
  0x1f   : > { %674 = vmatprep.subr.bf16.mxu1 %v719_v1 }
  0x21   : > { %655 = vmatpush3.bf16.msra.mxu0 %v705_v11 }
  0x22   : > { %675 = vmatpush3.bf16.msra.mxu1 %v706_v12  ;;  %656 = vmatprep.subr.bf16.mxu0 %v719_v1 }
  0x23   : > { %676 = vmatprep.subr.bf16.mxu1 %v719_v1 }
  0x25   : > { %657 = vmatpush3.bf16.msra.mxu0 %v707_v13 }
  0x26   : > { %677 = vmatpush3.bf16.msra.mxu1 %v708_v14  ;;  %658 = vmatprep.subr.bf16.mxu0 %v719_v1 }
  0x27   : > { %678 = vmatprep.subr.bf16.mxu1 %v719_v1 }
  0x29   : > { %659 = vmatpush3.bf16.msra.mxu0 %v709_v15 }
  0x2a   : > { %679 = vmatpush3.bf16.msra.mxu1 %v710_v17 }
  0x2c   : > { %661 = vmatmul.mubr.bf16.vlgmr.msra.gmra.mxu0 %v264_v18 }
  0x2d   : > { %681 = vmatmul.mubr.bf16.vlgmr.msra.gmra.mxu1 %v264_v18 }
  0xec   : > { %v370_v22 = vpop.f32.mrf.mxu0 }
  0xed   : > { %v371_v23 = vadd.f32 %v604_v20, %v370_v22  ;;  %v481_v24 = vpop.f32.mrf.mxu1 }
  0xee   : > { %v482_v25 = vadd.f32 %v613_v21, %v481_v24  ;;  %v662_v26 = vpop.f32.mrf.mxu0 }
  0xef   : > { %v502_v27 = vpack.c.bf16 %v371_v23, %v371_v23  ;;  %v682_v28 = vpop.f32.mrf.mxu1 }
  0xf0   : > { %v504_v29 = vpack.c.bf16 %v482_v25, %v482_v25  ;;  %v373_v30 = vpop.f32.mrf.mxu0 }
  0xf1   : > { %503 = vst [vmem:[%s256_s24] sm:$0xf] %v502_v27  ;;  %v484_v31 = vpop.f32.mrf.mxu1 }
  0xf2   : > { %505 = vst [vmem:[%s827_s16] sm:$0xf] %v504_v29  ;;  %v663_v32 = vpop.f32.mrf.mxu0 }
  0xf3   : > { %v683_v33 = vpop.f32.mrf.mxu1 }
  0xf4 PF: > { %s17_s21 = sadd.s32 1, %s717_s21  }
  0xf5   : > { %p14_p4 = scmp.ge.s32.totalorder %s17_s21, 4  }
  0xf7   :  { %16 = sbr.rel (!%p14_p4) target bundleno = 1 (0x1), region = 82 }

// kernel: conditional_unet_decoder3d.9
= control target key start
LH: loop header
LB: loop body
LE: loop exit
PB: predicated region body
PF: predicated region fallthrough
CT: control target
= control target key end

     0   :  { %s2376_s0 = inlined_call_operand.vmem [shape: f32[2,1,128], index: 0, kind: input, shape index: {}]   ;;  %s2377_s1 = inlined_call_operand.vmem [shape: f32[2,1,128], index: 1, kind: input, shape index: {}]   ;;  %s2378_s2 = inlined_call_operand.vmem [shape: f32[2,64,128], index: 2, kind: input, shape index: {}]   ;;  %s2379_s3 = inlined_call_operand.vmem [shape: bf16[2,128,128], index: 3, kind: input, shape index: {}]   ;;  %s2380_s4 = inlined_call_operand.vmem [shape: bf16[2,128,128], index: 4, kind: input, shape index: {}]   ;;  %s2381_s5 = inlined_call_operand.vmem [shape: bf16[128,128], index: 5, kind: input, shape index: {}]   ;;  %s2382_s6 = inlined_call_operand.vmem [shape: f32[1,128], index: 6, kind: input, shape index: {}]   ;;  %s2383_s7 = inlined_call_operand.vmem [shape: bf16[128,128], index: 7, kind: input, shape index: {}]   ;;  %s2384_s8 = inlined_call_operand.vmem [shape: f32[1,128], index: 8, kind: input, shape index: {}]   ;;  %s2385_s9 = inlined_call_operand.hbm [shape: f32[2,64,128], index: 9, kind: output, shape index: {0}]   ;;  %s2386_s10 = inlined_call_operand.hbm [shape: f32[2,1,128], index: 10, kind: output, shape index: {1}]   ;;  %s2387_s11 = inlined_call_operand.hbm [shape: f32[2,1,128], index: 11, kind: output, shape index: {2}]  }
   0x1   :  { %2393 = sst [smem:[#allocation14_spill]] %s2376_s0 }
   0x2   :  { %17 = vsyncpa [#allocation4], 0 }
   0x3   :  { %19 = vsyncpa [#allocation4 + $0x1], 0 }
   0x4   :  { %20 = vsyncpa [#allocation6], 0 }
   0x5   :  { %22 = vsyncpa [#allocation6 + $0x1], 0  ;;  %s2023_s17 = smov 0   ;;  %s2025_s18 = smov 0  }
   0x6   :  { %s2027_s19 = smov 0   ;;  %s2029_s20 = smov 0  }
   0x7   :  { %s2031_s21 = smov 0   ;;  %s2033_s22 = smov 0  }
   0x8 LB: > { %2394 = sst [smem:[#allocation10_spill]] %s1943_s19  ;;  %s2389_s23 = sadd.s32 4294967295, %s1955_s22   ;;  %s1955_s22 = sphi %s2033_s22, %s28_s22   ;;  %s1951_s21 = sphi %s2031_s21, %s2409_s21   ;;  %s1947_s20 = sphi %s2029_s20, %s2408_s20   ;;  %s1943_s19 = sphi %s2027_s19, %s2407_s19   ;;  %s1939_s18 = sphi %s2025_s18, %s2411_s18   ;;  %s1935_s17 = sphi %s2023_s17, %s2410_s17  }
   0x9   : > { %2395 = sst [smem:[#allocation11_spill]] %s1951_s21  ;;  %s2388_s24 = sadd.s32 4294967294, %s1955_s22  }
   0xa   : > { %s40_s25 = sadd.s32 1, %s1951_s21  ;;  %s265_s26 = sadd.s32 1, %s1943_s19 }
   0xb   : > { %p42_p0 = scmp.ge.s32.totalorder %s40_s25, 2  ;;  %p275_p1 = scmp.ne.s32.totalorder %s1943_s19, %s1939_s18 }
   0xc   : > { %p276_p2 = scmp.eq.s32.totalorder %s2389_s23, 1  ;;  %p281_p3 = scmp.ne.s32.totalorder %s1939_s18, %s1935_s17 }
   0xd   : > { %s2413_s25 = smov (%p42_p0, %s40_s25), 0  ;;  %p282_p5 = scmp.eq.s32.totalorder %s2388_s24, 1 }
   0xe   : > { %2396 = sst [smem:[#allocation12_spill]] %s2413_s25  ;;  %p2065_p4 = por %p276_p2, %p275_p1 }
   0xf   : > { %s260_s28 = ssub.s32 %s1951_s21, %s2413_s25  ;;  %p1476_p6 = scmp.ge.s32.totalorder %s1955_s22, 1 }
  0x10   : > { %p263_p7 = scmp.eq.s32.totalorder %s260_s28, 0  ;;  %p2074_p8 = por %p282_p5, %p281_p3 }
  0x11   : > { %p405_p9 = scmp.lt.s32.totalorder %s1955_s22, 3 }
  0x12   : > { %s2080_s30 = scalar_select %p263_p7, %s1943_s19, %s265_s26  }
  0x13   : > { %p406_p10 = pnand %p1476_p6, %p405_p9 }
  0x14   : > { %2399 = sst [smem:[#allocation13_spill]] %s2080_s30  ;;  %p473_p11 = scmp.lt.s32.totalorder (!%p406_p10), %s1947_s20, 1 }
  0x15   : > { %409 = sbr.rel (%p406_p10) target bundleno = 1108 (0x454), region = 56  ;;  %s2400_s0 = sld [smem:[#allocation14_spill]] (!%p406_p10) }
  0x16   : > { %s1530_s25 = sshll.u32 (!%p406_p10), %s1947_s20, 10  ;;  %s1958_s26 = smov (!%p406_p10), [#allocation3]  }
  0x17   : > { %s2253_s30 = scalar_lea.hbm (!%p406_p10), %s2385_s9, %s1530_s25 }
  0x1a   : > { %v1759_v0 = vld [vmem:[%s2381_s5 + $0x38] sm:$0xff]   ;;  %v1760_v1 = vld [vmem:[%s2381_s5 + $0x30] sm:$0xff]   ;;  %s474_s16 = scalar_select %p473_p11, %s1947_s20, 1  ;;  %v1761_v2 = vld [vmem:[%s2381_s5 + $0x28] sm:$0xff]  }
  0x1b   : > { %1579 = vmatprep.subr.bf16.mxu0 %v1759_v0  ;;  %v1762_v3 = vld [vmem:[%s2381_s5 + $0x20] sm:$0xff]   ;;  %v1763_v10 = vld [vmem:[%s2381_s5 + $0x18] sm:$0xff]   ;;  %v1764_v16 = vld [vmem:[%s2381_s5 + $0x10] sm:$0xff]  }
  0x1c   : > { %1580 = vmatpush3.bf16.msra.mxu0 %v1759_v0  ;;  %s475_s12 = scalar_lea.vmem %s2400_s0, %s474_s16  ;;  %s2096_s13 = sshll.u32 %s474_s16, 6  ;;  %v1765_v19 = vld [vmem:[%s2381_s5 + $0x8] sm:$0xff]   ;;  %v1766_v23 = vld [vmem:[%s2381_s5] sm:$0xff]  }
  0x1d   : > { %1581 = vmatprep.subr.bf16.mxu0 %v1760_v1  ;;  %s478_s14 = scalar_lea.vmem %s2377_s1, %s474_s16  ;;  %s2105_s19 = scalar_lea.vmem %s2378_s2, %s2096_s13  ;;  %v1484_v6 = vld [vmem:[%s475_s12] ss:$0 sm:$0xff] }
  0x1e   : > { %v2111_v4 = vld [vmem:[%s2105_s19] sm:$0xff]  ;;  %v2114_v5 = vld [vmem:[%s2105_s19 + $0x8] sm:$0xff]  ;;  %s2120_s24 = scalar_lea.vmem %s2379_s3, %s2096_s13  ;;  %v2133_v17 = vld [vmem:[%s2105_s19 + $0x10] sm:$0xff]  ;;  %s2145_s21 = scalar_lea.vmem %s2380_s4, %s2096_s13 }
  0x1f   : > { %v516_v7 = vmul.f32 %v1484_v6, %v2111_v4  ;;  %v517_v8 = vmul.f32 %v1484_v6, %v2114_v5  ;;  %v1485_v9 = vld [vmem:[%s478_s14] ss:$0 sm:$0xff]  ;;  %v1767_v13 = vld [vmem:[%s2120_s24 + $0x38] sm:$0xff]   ;;  %v1768_v15 = vld [vmem:[%s2120_s24 + $0x30] sm:$0xff]   ;;  %v518_v24 = vmul.f32 %v1484_v6, %v2133_v17  ;;  %s2218_s12 = sand.u32 1, %s1939_s18  }
  0x20   : > { %1582 = vmatpush3.bf16.msra.mxu0 %v1760_v1  ;;  %1603 = vmatprep.subr.bf16.mxu1 %v1767_v13  ;;  %v2136_v18 = vld [vmem:[%s2105_s19 + $0x18] sm:$0xff]  ;;  %v2148_v20 = vld [vmem:[%s2105_s19 + $0x20] sm:$0xff]  ;;  %v2151_v21 = vld [vmem:[%s2105_s19 + $0x28] sm:$0xff]  ;;  %s2221_s14 = scalar_lea.vmem [#allocation5], %s2218_s12  ;;  %s2225_s15 = scalar_lea.vmem [#allocation7], %s2218_s12 }
  0x21   : > { %1583 = vmatprep.subr.bf16.mxu0 %v1761_v2  ;;  %v531_v11 = vadd.f32 %v1485_v9, %v516_v7  ;;  %v532_v12 = vadd.f32 %v1485_v9, %v517_v8  ;;  %1604 = vmatpush3.bf16.xpose.msra.mxu1 %v1767_v13  ;;  %v1769_v22 = vld [vmem:[%s2120_s24 + $0x28] sm:$0xff]   ;;  %v519_v25 = vmul.f32 %v1484_v6, %v2136_v18  ;;  %v2162_v28 = vld [vmem:[%s2105_s19 + $0x30] sm:$0xff]  ;;  %v2165_v29 = vld [vmem:[%s2105_s19 + $0x38] sm:$0xff]  ;;  %s1477_s28 = sshll.u32 %s2218_s12, 6 }
  0x22   : > { %1605 = vmatprep.subr.bf16.mxu1 %v1768_v15  ;;  %v520_v26 = vmul.f32 %v1484_v6, %v2148_v20  ;;  %v521_v27 = vmul.f32 %v1484_v6, %v2151_v21  ;;  %v533_v30 = vadd.f32 %v1485_v9, %v518_v24  ;;  %v1770_v34 = vld [vmem:[%s2120_s24 + $0x20] sm:$0xff]   ;;  %v522_v36 = vmul.f32 %v1484_v6, %v2162_v28  ;;  %v1771_v41 = vld [vmem:[%s2120_s24 + $0x18] sm:$0xff]   ;;  %v1772_v43 = vld [vmem:[%s2120_s24 + $0x10] sm:$0xff]   ;;  %s2234_s23 = scalar_lea.vmem [#allocation3], %s1477_s28 }
  0x23   : > { %v539_v14 = vpack.c.bf16 %v532_v12, %v531_v11  ;;  %v534_v31 = vadd.f32 %v1485_v9, %v519_v25  ;;  %v523_v37 = vmul.f32 %v1484_v6, %v2165_v29  ;;  %v1773_v44 = vld [vmem:[%s2120_s24 + $0x8] sm:$0xff]   ;;  %v1774_v45 = vld [vmem:[%s2120_s24] sm:$0xff]   ;;  %v1775_v13 = vld [vmem:[%s2145_s21 + $0x38] sm:$0xff]   ;;  %s1272_s19 = sshll.u32 %s2234_s23, 4  ;;  %s2255_s19 = int_to_ptr.vmem [resolvable:$true] %s1272_s19 }
  0x24   : > { %1584 = vmatpush3.bf16.msra.mxu0 %v1761_v2  ;;  %v535_v32 = vadd.f32 %v1485_v9, %v520_v26  ;;  %v536_v33 = vadd.f32 %v1485_v9, %v521_v27  ;;  %v537_v39 = vadd.f32 %v1485_v9, %v522_v36  ;;  %v1486_v48 = vld [vmem:[%s2382_s6] ss:$0 sm:$0xff]  ;;  %s1823_s28 = scalar_lea.vmem %s2255_s19, 1024 }
  0x25   : > { %1585 = vmatprep.subr.bf16.mxu0 %v1762_v3  ;;  %1595 = vmatprep.mubr.bf16.mxu0 %v539_v14  ;;  %v540_v35 = vpack.c.bf16 %v534_v31, %v533_v30  ;;  %v538_v40 = vadd.f32 %v1485_v9, %v523_v37  ;;  %v1776_v14 = vld [vmem:[%s2145_s21 + $0x30] sm:$0xff]   ;;  %p1824_p12 = scmp.ne.s32.totalorder %s2255_s19, %s1823_s28 }
  0x26   : > { %v541_v38 = vpack.c.bf16 %v536_v33, %v535_v32 }
  0x27   : > { %v542_v42 = vpack.c.bf16 %v538_v40, %v537_v39  ;;  %v1778_v39 = vld [vmem:[%s2145_s21 + $0x20] sm:$0xff]   ;;  %p1825_p13 = pnand %p1824_p12, %p2065_p4 }
  0x28   : > { %1586 = vmatpush3.bf16.msra.mxu0 %v1762_v3 }
  0x29   : > { %1587 = vmatprep.subr.bf16.mxu0 %v1763_v10  ;;  %1606 = vmatpush3.bf16.xpose.msra.mxu1 %v1768_v15  ;;  %v687_v15 = vlaneseq  ;;  %p1826_p0 = pneg %p1825_p13 }
  0x2a   : > { %1607 = vmatprep.subr.bf16.mxu1 %v1769_v22 }
  0x2c   : > { %1588 = vmatpush3.bf16.msra.mxu0 %v1763_v10 }
  0x2d   : > { %1589 = vmatprep.subr.bf16.mxu0 %v1764_v16 }
  0x30   : > { %1590 = vmatpush3.bf16.msra.mxu0 %v1764_v16  ;;  %v688_v16 = vand.u32 127, %v687_v15 }
  0x31   : > { %1591 = vmatprep.subr.bf16.mxu0 %v1765_v19  ;;  %1608 = vmatpush3.bf16.xpose.msra.mxu1 %v1769_v22 }
  0x32   : > { %1609 = vmatprep.subr.bf16.mxu1 %v1770_v34  ;;  %vm689_vm0 = vcmp.lt.s32.totalorder %v688_v16, 8 }
  0x34   : > { %1592 = vmatpush3.bf16.msra.mxu0 %v1765_v19 }
  0x35   : > { %1593 = vmatprep.subr.bf16.mxu0 %v1766_v23 }
  0x38   : > { %1594 = vmatpush3.bf16.msra.mxu0 %v1766_v23 }
  0x39   : > { %1610 = vmatpush3.bf16.xpose.msra.mxu1 %v1770_v34  ;;  %1627 = vmatprep.subr.bf16.mxu0 %v1775_v13 }
  0x3a   : > { %1611 = vmatprep.subr.bf16.mxu1 %v1771_v41 }
  0x3b   : > { %1596 = vmatmul.mubr.bf16.vlgmr.msra.gmra.mxu0 %v540_v35  ;;  %v1777_v35 = vld [vmem:[%s2145_s21 + $0x28] sm:$0xff]  }
  0x3c   : > { %1599 = vmatprep.mubr.bf16.mxu0 %v541_v38  ;;  %1628 = vmatpush3.bf16.msra.mxu0 %v1775_v13 }
  0x3d   : > { %1629 = vmatprep.subr.bf16.mxu0 %v1776_v14 }
  0x40   : > { %1630 = vmatpush3.bf16.msra.mxu0 %v1776_v14 }
  0x41   : > { %1612 = vmatpush3.bf16.xpose.msra.mxu1 %v1771_v41  ;;  %1631 = vmatprep.subr.bf16.mxu0 %v1777_v35  ;;  %v1779_v41 = vld [vmem:[%s2145_s21 + $0x18] sm:$0xff]  }
  0x42   : > { %1613 = vmatprep.subr.bf16.mxu1 %v1772_v43 }
  0x43   : > { %1600 = vmatmul.mubr.bf16.gmra.mxu0 %v542_v42  ;;  %v1780_v42 = vld [vmem:[%s2145_s21 + $0x10] sm:$0xff]  }
  0x44   : > { %1632 = vmatpush3.bf16.msra.mxu0 %v1777_v35 }
  0x45   : > { %1633 = vmatprep.subr.bf16.mxu0 %v1778_v39 }
  0x48   : > { %1634 = vmatpush3.bf16.msra.mxu0 %v1778_v39 }
  0x49   : > { %1614 = vmatpush3.bf16.xpose.msra.mxu1 %v1772_v43  ;;  %1635 = vmatprep.subr.bf16.mxu0 %v1779_v41  ;;  %v1781_v43 = vld [vmem:[%s2145_s21 + $0x8] sm:$0xff]  }
  0x4a   : > { %1615 = vmatprep.subr.bf16.mxu1 %v1773_v44 }
  0x4c   : > { %1636 = vmatpush3.bf16.msra.mxu0 %v1779_v41 }
  0x4d   : > { %1637 = vmatprep.subr.bf16.mxu0 %v1780_v42 }
  0x50   : > { %1638 = vmatpush3.bf16.msra.mxu0 %v1780_v42 }
  0x51   : > { %1616 = vmatpush3.bf16.xpose.msra.mxu1 %v1773_v44  ;;  %1639 = vmatprep.subr.bf16.mxu0 %v1781_v43  ;;  %v1782_v44 = vld [vmem:[%s2145_s21] sm:$0xff]   ;;  %s1827_s21 = sshll.u32 %s1958_s26, 4  ;;  %s1828_s21 = int_to_ptr.vmem [resolvable:$false] %s1827_s21 }
  0x52   : > { %1617 = vmatprep.subr.bf16.mxu1 %v1774_v45  ;;  %s1829_s25 = scalar_lea.vmem %s1828_s21, 2048  ;;  %p1830_p1 = scmp.lt.s32.totalorder %s2255_s19, %s1828_s21 }
  0x53   : > { %p1831_p2 = scmp.lt.s32.totalorder %s1829_s25, %s1823_s28 }
  0x54   : > { %1640 = vmatpush3.bf16.msra.mxu0 %v1781_v43 }
  0x55   : > { %1641 = vmatprep.subr.bf16.mxu0 %v1782_v44  ;;  %p1832_p3 = por %p1831_p2, %p1830_p1 }
  0x57   : > { %p1833_p5 = pnand %p1832_p3, %p1826_p0 }
  0x58   : > { %1642 = vmatpush3.bf16.msra.mxu0 %v1782_v44 }
  0x59   : > { %1618 = vmatpush3.bf16.xpose.msra.mxu1 %v1774_v45 }
  0xfb   : > { %v1597_v46 = vpop.f32.mrf.mxu0 }
  0xfc   : > { %v657_v52 = vadd.f32 %v1597_v46, %v1486_v48 }
  0xfd   : > { %v648_v47 = vpop.f32.mrf.mxu0 }
  0xfe   : > { %v649_v50 = vadd.f32 %v1486_v48, %v648_v47  ;;  %v681_v59 = vmul.f32 0.088388346, %v657_v52 }
  0xff   : > { %v1598_v49 = vpop.f32.mrf.mxu0 }
 0x100   : > { %v660_v51 = vadd.f32 %v1598_v49, %v1486_v48  ;;  %v679_v57 = vmul.f32 0.088388346, %v649_v50 }
 0x101   : > { %v651_v53 = vpop.f32.mrf.mxu0 }
 0x102   : > { %v652_v54 = vadd.f32 %v1486_v48, %v651_v53  ;;  %v682_v55 = vmul.f32 0.088388346, %v660_v51 }
 0x103   : > { %v1601_v56 = vpop.f32.mrf.mxu0 }
 0x104   : > { %v680_v58 = vmul.f32 0.088388346, %v652_v54  ;;  %v691_v62 = vpack.c.bf16 %v682_v55, %v681_v59  ;;  %v673_v2 = vadd.f32 %v1601_v56, %v1486_v48 }
 0x105   : > { %v664_v60 = vpop.f32.mrf.mxu0 }
 0x106   : > { %v690_v61 = vpack.c.bf16 %v680_v58, %v679_v57  ;;  %v665_v0 = vadd.f32 %v1486_v48, %v664_v60  ;;  %v685_v10 = vmul.f32 0.088388346, %v673_v2 }
 0x107   : > { %v1602_v63 = vpop.f32.mrf.mxu0 }
 0x108   : > { %v676_v1 = vadd.f32 %v1602_v63, %v1486_v48  ;;  %1619 = vmatprep.mubr.bf16.mxu1 %v690_v61  ;;  %v683_v8 = vmul.f32 0.088388346, %v665_v0 }
 0x109   : > { %v667_v3 = vpop.f32.mrf.mxu0  ;;  %1620 = vmatmul.mubr.bf16.vlgmr.msra.gmra.mxu1 %v691_v62 }
 0x10a   : > { %v668_v6 = vadd.f32 %v1486_v48, %v667_v3  ;;  %v686_v7 = vmul.f32 0.088388346, %v676_v1 }
 0x10c   : > { %v684_v9 = vmul.f32 0.088388346, %v668_v6  ;;  %v693_v12 = vpack.c.bf16 %v686_v7, %v685_v10 }
 0x10e   : > { %v692_v11 = vpack.c.bf16 %v684_v9, %v683_v8 }
 0x110   : > { %1623 = vmatprep.mubr.bf16.mxu1 %v692_v11 }
 0x111   : > { %1624 = vmatmul.mubr.bf16.gmra.mxu1 %v693_v12 }
 0x1c9   : > { %v1621_v19 = vpop.f32.mrf.mxu1 }
 0x1ca   : > { %v827_v22 = vsel %vm689_vm0, %v1621_v19, -1e+30 }
 0x1cb   : > { %837 = vmax.xlane.f32.xlu1 %v827_v22  ;;  %v792_v23 = vpop.f32.mrf.mxu1 }
 0x1cc   : > { %v825_v24 = vsel %vm689_vm0, %v792_v23, -1e+30  ;;  %v1783_v23 = vld [vmem:[%s2383_s7 + $0x38] sm:$0xff]  }
 0x1cd   : > { %833 = vmax.xlane.f32.xlu0 %v825_v24  ;;  %v1622_v25 = vpop.f32.mrf.mxu1  ;;  %1651 = vmatprep.subr.bf16.mxu0 %v1783_v23 }
 0x1ce   : > { %v828_v26 = vsel %vm689_vm0, %v1622_v25, -1e+30  ;;  %1675 = vmatprep.subr.bf16.mxu1 %v1783_v23  ;;  %v1785_v25 = vld [vmem:[%s2383_s7 + $0x28] sm:$0xff]  }
 0x1cf   : > { %839 = vmax.xlane.f32.xlu1 %v828_v26  ;;  %v795_v27 = vpop.f32.mrf.mxu1  ;;  %1683 = vmatpush3.bf16.msra.mxu1 %v1783_v23 }
 0x1d0   : > { %v826_v30 = vsel %vm689_vm0, %v795_v27, -1e+30  ;;  %v1787_v27 = vld [vmem:[%s2383_s7 + $0x18] sm:$0xff]  }
 0x1d1   : > { %835 = vmax.xlane.f32.xlu0 %v826_v30  ;;  %v1625_v31 = vpop.f32.mrf.mxu1 }
 0x1d2   : > { %v831_v37 = vsel %vm689_vm0, %v1625_v31, -1e+30  ;;  %v1789_v31 = vld [vmem:[%s2383_s7 + $0x8] sm:$0xff]  }
 0x1d3   : > { %v808_v32 = vpop.f32.mrf.mxu1 }
 0x1d4   : > { %v829_v33 = vsel %vm689_vm0, %v808_v32, -1e+30  ;;  %v1790_v32 = vld [vmem:[%s2383_s7] sm:$0xff]  }
 0x1d5   : > { %841 = vmax.xlane.f32.xlu0 %v829_v33  ;;  %v1626_v34 = vpop.f32.mrf.mxu1 }
 0x1d6   : > { %v832_v40 = vsel %vm689_vm0, %v1626_v34, -1e+30 }
 0x1d7   : > { %v811_v36 = vpop.f32.mrf.mxu1 }
 0x1d8   : > { %v830_v38 = vsel %vm689_vm0, %v811_v36, -1e+30 }
 0x1d9   : > { %845 = vmax.xlane.f32.xlu0 %v831_v37  ;;  %843 = vmax.xlane.f32.xlu1 %v830_v38 }
 0x1dd   : > { %847 = vmax.xlane.f32.xlu1 %v832_v40 }
 0x254   : > { %v838_v45 = vpop.xlane.xlu1 %837 }
 0x255   : > { %v851_v46 = vsub.f32 %v827_v22, %v838_v45 }
 0x256   : > { %v834_v47 = vpop.xlane.xlu0 %833 }
 0x257   : > { %v849_v48 = vsub.f32 %v825_v24, %v834_v47  ;;  %v861_v50 = vmul.f32 1.442695, %v851_v46  ;;  %v1784_v24 = vld [vmem:[%s2383_s7 + $0x30] sm:$0xff]  }
 0x258   : > { %v840_v49 = vpop.xlane.xlu1 %839  ;;  %1676 = vmatprep.subr.bf16.mxu1 %v1784_v24 }
 0x259   : > { %v857_v51 = vmul.f32 1.442695, %v849_v48  ;;  %v852_v52 = vsub.f32 %v828_v26, %v840_v49  ;;  %1684 = vmatpush3.bf16.msra.mxu1 %v1784_v24  ;;  %v1786_v26 = vld [vmem:[%s2383_s7 + $0x20] sm:$0xff]  }
 0x25a   : > { %v836_v53 = vpop.xlane.xlu0 %835  ;;  %1677 = vmatprep.subr.bf16.mxu1 %v1785_v25 }
 0x25b   : > { %1791 = vpow2.f32 %v857_v51  ;;  %v863_v54 = vmul.f32 1.442695, %v852_v52  ;;  %v850_v55 = vsub.f32 %v826_v30, %v836_v53  ;;  %v1788_v30 = vld [vmem:[%s2383_s7 + $0x10] sm:$0xff]  }
 0x25c   : > { %1793 = vpow2.f32 %v861_v50 }
 0x25d   : > { %v859_v56 = vmul.f32 1.442695, %v850_v55  ;;  %1795 = vpow2.f32 %v863_v54  ;;  %1685 = vmatpush3.bf16.msra.mxu1 %v1785_v25 }
 0x25e   : > { %v842_v57 = vpop.xlane.xlu0 %841  ;;  %1678 = vmatprep.subr.bf16.mxu1 %v1786_v26 }
 0x25f   : > { %1797 = vpow2.f32 %v859_v56  ;;  %v853_v58 = vsub.f32 %v829_v33, %v842_v57 }
 0x261   : > { %v865_v59 = vmul.f32 1.442695, %v853_v58  ;;  %1686 = vmatpush3.bf16.msra.mxu1 %v1786_v26 }
 0x262   : > { %v846_v60 = vpop.xlane.xlu0 %845  ;;  %v844_v61 = vpop.xlane.xlu1 %843  ;;  %1679 = vmatprep.subr.bf16.mxu1 %v1787_v27 }
 0x263   : > { %1799 = vpow2.f32 %v865_v59  ;;  %v855_v62 = vsub.f32 %v831_v37, %v846_v60  ;;  %v854_v63 = vsub.f32 %v830_v38, %v844_v61 }
 0x265   : > { %v869_v0 = vmul.f32 1.442695, %v855_v62  ;;  %v867_v1 = vmul.f32 1.442695, %v854_v63  ;;  %1687 = vmatpush3.bf16.msra.mxu1 %v1787_v27 }
 0x266   : > { %v848_v2 = vpop.xlane.xlu1 %847  ;;  %1680 = vmatprep.subr.bf16.mxu1 %v1788_v30 }
 0x267   : > { %1801 = vpow2.f32 %v869_v0  ;;  %v856_v3 = vsub.f32 %v832_v40, %v848_v2 }
 0x268   : > { %v1792_v6 = vpop.eup %1791  ;;  %1803 = vpow2.f32 %v867_v1 }
 0x269   : > { %v871_v7 = vmul.f32 1.442695, %v856_v3  ;;  %873 = vadd.xlane.f32.xlu0 %v1792_v6  ;;  %v1794_v8 = vpop.eup %1793  ;;  %1688 = vmatpush3.bf16.msra.mxu1 %v1788_v30 }
 0x26a   : > { %v1796_v9 = vpop.eup %1795  ;;  %1681 = vmatprep.subr.bf16.mxu1 %v1789_v31 }
 0x26b   : > { %1805 = vpow2.f32 %v871_v7  ;;  %v890_v12 = vpack.c.bf16 %v1796_v9, %v1794_v8  ;;  %v1957_v7 = vmov 0.0  }
 0x26c   : > { %v1798_v10 = vpop.eup %1797  ;;  %1206 = vst [vmem:[%s2221_s14] sm:$0x1] %v1957_v7  ;;  %1207 = vst [vmem:[%s2225_s15] sm:$0x1] %v1957_v7 }
 0x26d   : > { %877 = vadd.xlane.f32.xlu0 %v1794_v8  ;;  %875 = vadd.xlane.f32.xlu1 %v1798_v10  ;;  %v889_v11 = vpack.c.bf16 %v1798_v10, %v1792_v6 }
 0x26e   : > { %1689 = vmatpush3.bf16.msra.mxu1 %v1789_v31 }
 0x26f   : > { %1643 = vmatprep.mubr.bf16.mxu0 %v889_v11  ;;  %1682 = vmatprep.subr.bf16.mxu1 %v1790_v32 }
 0x270   : > { %v1800_v13 = vpop.eup %1799  ;;  %1644 = vmatmul.mubr.bf16.vlgmr.msra.gmra.mxu0 %v890_v12 }
 0x271   : > { %881 = vadd.xlane.f32.xlu0 %v1800_v13  ;;  %879 = vadd.xlane.f32.xlu1 %v1796_v9  ;;  %v1519_v9 = vld [vmem:[%s2384_s8] ss:$0 sm:$0xff] }
 0x272   : > { %1652 = vmatpush3.bf16.msra.mxu0 %v1783_v23  ;;  %1690 = vmatpush3.bf16.msra.mxu1 %v1790_v32 }
 0x273   : > { %1653 = vmatprep.subr.bf16.mxu0 %v1784_v24 }
 0x274   : > { %v1802_v14 = vpop.eup %1801 }
 0x275   : > { %v1804_v15 = vpop.eup %1803  ;;  %885 = vadd.xlane.f32.xlu0 %v1802_v14 }
 0x276   : > { %883 = vadd.xlane.f32.xlu1 %v1804_v15  ;;  %v891_v16 = vpack.c.bf16 %v1804_v15, %v1800_v13  ;;  %1654 = vmatpush3.bf16.msra.mxu0 %v1784_v24 }
 0x277   : > { %1655 = vmatprep.subr.bf16.mxu0 %v1785_v25 }
 0x278   : > { %v1806_v19 = vpop.eup %1805  ;;  %1647 = vmatprep.mubr.bf16.mxu0 %v891_v16 }
 0x279   : > { %v892_v22 = vpack.c.bf16 %v1806_v19, %v1802_v14 }
 0x27a   : > { %887 = vadd.xlane.f32.xlu1 %v1806_v19  ;;  %1656 = vmatpush3.bf16.msra.mxu0 %v1785_v25 }
 0x27b   : > { %1648 = vmatmul.mubr.bf16.gmra.mxu0 %v892_v22  ;;  %1657 = vmatprep.subr.bf16.mxu0 %v1786_v26 }
 0x27e   : > { %1658 = vmatpush3.bf16.msra.mxu0 %v1786_v26 }
 0x27f   : > { %1659 = vmatprep.subr.bf16.mxu0 %v1787_v27 }
 0x282   : > { %1660 = vmatpush3.bf16.msra.mxu0 %v1787_v27 }
 0x283   : > { %1661 = vmatprep.subr.bf16.mxu0 %v1788_v30 }
 0x286   : > { %1662 = vmatpush3.bf16.msra.mxu0 %v1788_v30 }
 0x287   : > { %1663 = vmatprep.subr.bf16.mxu0 %v1789_v31 }
 0x28a   : > { %1664 = vmatpush3.bf16.msra.mxu0 %v1789_v31 }
 0x28b   : > { %1665 = vmatprep.subr.bf16.mxu0 %v1790_v32 }
 0x28e   : > { %1666 = vmatpush3.bf16.msra.mxu0 %v1790_v32 }
 0x2f2   : > { %v874_v34 = vpop.xlane.xlu0 %873 }
 0x2f3   : > { %1807 = vrcp.f32 %v874_v34 }
 0x2f6   : > { %v876_v33 = vpop.xlane.xlu1 %875  ;;  %v878_v36 = vpop.xlane.xlu0 %877 }
 0x2fa   : > { %v880_v35 = vpop.xlane.xlu1 %879  ;;  %v882_v38 = vpop.xlane.xlu0 %881 }
 0x2fb   : > { %1809 = vrcp.f32 %v880_v35 }
 0x2fc   : > { %1811 = vrcp.f32 %v876_v33 }
 0x2fd   : > { %1813 = vrcp.f32 %v878_v36 }
 0x2fe   : > { %1815 = vrcp.f32 %v882_v38  ;;  %v886_v41 = vpop.xlane.xlu0 %885 }
 0x2ff   : > { %v884_v37 = vpop.xlane.xlu1 %883 }
 0x300   : > { %v1808_v43 = vpop.eup %1807 }
 0x303   : > { %v888_v39 = vpop.xlane.xlu1 %887 }
 0x304   : > { %1817 = vrcp.f32 %v888_v39 }
 0x305   : > { %1819 = vrcp.f32 %v884_v37 }
 0x306   : > { %1821 = vrcp.f32 %v886_v41 }
 0x308   : > { %v1810_v45 = vpop.eup %1809 }
 0x309   : > { %v1812_v46 = vpop.eup %1811 }
 0x30a   : > { %v1814_v49 = vpop.eup %1813 }
 0x30b   : > { %v1816_v57 = vpop.eup %1815 }
 0x311   : > { %v1818_v59 = vpop.eup %1817 }
 0x312   : > { %v1820_v60 = vpop.eup %1819 }
 0x313   : > { %v1822_v63 = vpop.eup %1821 }
 0x330   : > { %v1645_v40 = vpop.f32.mrf.mxu0 }
 0x331   : > { %v1032_v52 = vmul.f32 %v1814_v49, %v1645_v40 }
 0x332   : > { %v991_v42 = vpop.f32.mrf.mxu0 }
 0x333   : > { %v1030_v50 = vmul.f32 %v1808_v43, %v991_v42 }
 0x334   : > { %v1646_v44 = vpop.f32.mrf.mxu0 }
 0x335   : > { %v1033_v47 = vmul.f32 %v1810_v45, %v1646_v44 }
 0x336   : > { %v994_v48 = vpop.f32.mrf.mxu0 }
 0x337   : > { %v1031_v51 = vmul.f32 %v1812_v46, %v994_v48  ;;  %v1039_v54 = vpack.c.bf16 %v1033_v47, %v1032_v52 }
 0x339   : > { %v1038_v53 = vpack.c.bf16 %v1031_v51, %v1030_v50 }
 0x33b   : > { %v1649_v55 = vpop.f32.mrf.mxu0  ;;  %1667 = vmatprep.mubr.bf16.mxu0 %v1038_v53 }
 0x33c   : > { %1668 = vmatmul.mubr.bf16.vlgmr.msra.gmra.mxu0 %v1039_v54  ;;  %v1036_v2 = vmul.f32 %v1822_v63, %v1649_v55 }
 0x33d   : > { %v1007_v56 = vpop.f32.mrf.mxu0 }
 0x33e   : > { %v1034_v0 = vmul.f32 %v1816_v57, %v1007_v56 }
 0x33f   : > { %v1650_v58 = vpop.f32.mrf.mxu0 }
 0x340   : > { %v1037_v61 = vmul.f32 %v1818_v59, %v1650_v58 }
 0x341   : > { %v1010_v62 = vpop.f32.mrf.mxu0 }
 0x342   : > { %v1035_v1 = vmul.f32 %v1820_v60, %v1010_v62  ;;  %v1041_v6 = vpack.c.bf16 %v1037_v61, %v1036_v2 }
 0x344   : > { %v1040_v3 = vpack.c.bf16 %v1035_v1, %v1034_v0 }
 0x346   : > { %1671 = vmatprep.mubr.bf16.mxu1 %v1040_v3 }
 0x347   : > { %1672 = vmatmul.mubr.bf16.vlgmr.msra.gmra.mxu1 %v1041_v6 }
 0x3fc   : > { %v1669_v8 = vpop.f32.mrf.mxu0 }
 0x3fd   : > { %v1173_v10 = vadd.f32 %v1669_v8, %v2133_v17 }
 0x3fe   : > { %v1140_v11 = vpop.f32.mrf.mxu0 }
 0x3ff   : > { %v1188_v12 = vadd.f32 %v1519_v9, %v1173_v10  ;;  %v1171_v13 = vadd.f32 %v1140_v11, %v2111_v4 }
 0x400   : > { %v1670_v14 = vpop.f32.mrf.mxu0 }
 0x401   : > { %1196 = vst [vmem:[%s2234_s23 + $0x10] sm:$0xff] %v1188_v12  ;;  %v1186_v15 = vadd.f32 %v1519_v9, %v1171_v13  ;;  %v1174_v16 = vadd.f32 %v1670_v14, %v2136_v18  ;;  %v1227_v30 = vmul.f32 %v1188_v12, %v1188_v12 }
 0x402   : > { %v1143_v19 = vpop.f32.mrf.mxu0 }
 0x403   : > { %1194 = vst [vmem:[%s2234_s23] sm:$0xff] %v1186_v15  ;;  %v1189_v22 = vadd.f32 %v1519_v9, %v1174_v16  ;;  %v1172_v17 = vadd.f32 %v1143_v19, %v2114_v5  ;;  %v1225_v4 = vmul.f32 %v1186_v15, %v1186_v15 }
 0x405   : > { %1197 = vst [vmem:[%s2234_s23 + $0x18] sm:$0xff] %v1189_v22  ;;  %v1187_v23 = vadd.f32 %v1519_v9, %v1172_v17  ;;  %v1228_v36 = vmul.f32 %v1189_v22, %v1189_v22 }
 0x407   : > { %1195 = vst [vmem:[%s2234_s23 + $0x8] sm:$0xff] %v1187_v23  ;;  %v1209_v24 = vadd.f32 %v1187_v23, %v1186_v15  ;;  %v1226_v25 = vmul.f32 %v1187_v23, %v1187_v23  ;;  %v1673_v26 = vpop.f32.mrf.mxu1 }
 0x408   : > { %v1177_v27 = vadd.f32 %v1673_v26, %v2162_v28 }
 0x409   : > { %v1210_v18 = vadd.f32 %v1209_v24, %v1188_v12  ;;  %v1233_v31 = vadd.f32 %v1226_v25, %v1225_v4  ;;  %v1156_v32 = vpop.f32.mrf.mxu1 }
 0x40a   : > { %v1192_v33 = vadd.f32 %v1519_v9, %v1177_v27  ;;  %v1175_v5 = vadd.f32 %v1156_v32, %v2148_v20 }
 0x40b   : > { %v1234_v34 = vadd.f32 %v1233_v31, %v1227_v30  ;;  %v1674_v35 = vpop.f32.mrf.mxu1  ;;  %v1211_v38 = vadd.f32 %v1210_v18, %v1189_v22 }
 0x40c   : > { %1200 = vst [vmem:[%s2234_s23 + $0x30] sm:$0xff] %v1192_v33  ;;  %v1190_v37 = vadd.f32 %v1519_v9, %v1175_v5  ;;  %v1178_v39 = vadd.f32 %v1674_v35, %v2165_v29 }
 0x40d   : > { %v1159_v28 = vpop.f32.mrf.mxu1  ;;  %v1235_v41 = vadd.f32 %v1234_v34, %v1228_v36 }
 0x40e   : > { %1198 = vst [vmem:[%s2234_s23 + $0x20] sm:$0xff] %v1190_v37  ;;  %v1229_v40 = vmul.f32 %v1190_v37, %v1190_v37  ;;  %v1193_v42 = vadd.f32 %v1519_v9, %v1178_v39  ;;  %v1176_v20 = vadd.f32 %v1159_v28, %v2151_v21  ;;  %v1212_v29 = vadd.f32 %v1211_v38, %v1190_v37 }
 0x410   : > { %1201 = vst [vmem:[%s2234_s23 + $0x38] sm:$0xff] %v1193_v42  ;;  %v1191_v43 = vadd.f32 %v1519_v9, %v1176_v20  ;;  %v1236_v44 = vadd.f32 %v1235_v41, %v1229_v40 }
 0x412   : > { %1199 = vst [vmem:[%s2234_s23 + $0x28] sm:$0xff] %v1191_v43  ;;  %v1213_v45 = vadd.f32 %v1212_v29, %v1191_v43  ;;  %v1230_v46 = vmul.f32 %v1191_v43, %v1191_v43 }
 0x413   : > { %1836 = shalt.err (!%p1833_p5)
}
 0x414   : > { %s1837_s23 = scalar_lea.hbm %s2253_s30, 1024  ;;  %s1841_s26 = scalar_lea.hbm %s2385_s9, 2048 }
 0x415   : > { %p1838_p6 = scmp.ne.s32.totalorder %s2253_s30, %s1837_s23  ;;  %p1842_p10 = scmp.lt.s32.totalorder %s2253_s30, %s2385_s9 }
 0x416   : > { %p1843_p11 = scmp.lt.s32.totalorder %s1841_s26, %s1837_s23 }
 0x417   : > { %p1839_p7 = pnand %p1838_p6, %p2065_p4 }
 0x418   : > { %p1844_p12 = por %p1843_p11, %p1842_p10 }
 0x419   : > { %p1840_p9 = pneg %p1839_p7 }
 0x41b   : > { %p1845_p13 = pnand %p1844_p12, %p1840_p9 }
 0x41d   : > { %1848 = shalt.err (!%p1845_p13)
}
 0x41e   : > { %s1959_s28 = smov 128   ;;  %s1960_s21 = smov 8   ;;  %v1231_v21 = vmul.f32 %v1192_v33, %v1192_v33  ;;  %v1214_v47 = vadd.f32 %v1213_v45, %v1192_v33  ;;  %v1237_v48 = vadd.f32 %v1236_v44, %v1230_v46  ;;  %v1232_v49 = vmul.f32 %v1193_v42, %v1193_v42  ;;  %v1208_v62 = vld [vmem:[%s2221_s14] sm:$0x1] }
 0x41f   : > { %s2401_s25 = scalar_lea.sflag [#allocation4], %s2218_s12  ;;  %s2402_s0 = sadd.s32 4294967295, %s1955_s22   ;;  %v1224_v1 = vld [vmem:[%s2225_s15] sm:$0x1] }
 0x420   : > { %1691 = dma.vmem_to_hbm [thread:$0]  (%p2065_p4), %s2255_s19, 1024, %s2253_s30, %s2401_s25, %s1959_s28, %s1959_s28, %s1960_s21   ;;  %v1215_v50 = vadd.f32 %v1214_v47, %v1193_v42  ;;  %v1238_v51 = vadd.f32 %v1237_v48, %v1231_v21 }
 0x421   : > { %s2284_s12 = sand.u32 1, %s2402_s0   ;;  %s1523_s19 = sshll.u32 %s1947_s20, 4 }
 0x422   : > { %v1216_v52 = vrot.slane %v1215_v50, 4  ;;  %v1239_v53 = vadd.f32 %v1238_v51, %v1232_v49  ;;  %s1288_s30 = sshll.u32 %s2221_s14, 4  ;;  %s1301_s16 = sshll.u32 %s2225_s15, 4  ;;  %s2296_s30 = int_to_ptr.vmem [resolvable:$true] %s1288_s30  ;;  %s2304_s16 = int_to_ptr.vmem [resolvable:$true] %s1301_s16 }
 0x423   : > { %s2294_s24 = scalar_lea.hbm %s2386_s10, %s1523_s19  ;;  %s2302_s28 = scalar_lea.hbm %s2387_s11, %s1523_s19 }
 0x424   : > { %v1217_v54 = vadd.f32 %v1216_v52, %v1215_v50  ;;  %v1240_v55 = vrot.slane %v1239_v53, 4  ;;  %s1849_s25 = scalar_lea.vmem %s2296_s30, 16  ;;  %s1961_s0 = smov [#allocation5]  }
 0x425   : > { %p1850_p0 = scmp.ne.s32.totalorder %s2296_s30, %s1849_s25  ;;  %s1853_s23 = sshll.u32 %s1961_s0, 4  ;;  %s1854_s23 = int_to_ptr.vmem [resolvable:$false] %s1853_s23 }
 0x426   : > { %v1241_v56 = vadd.f32 %v1240_v55, %v1239_v53  ;;  %v1218_v57 = vrot.slane %v1217_v54, 2  ;;  %s1855_s13 = scalar_lea.vmem %s1854_s23, 32  ;;  %p1856_p3 = scmp.lt.s32.totalorder %s2296_s30, %s1854_s23 }
 0x427   : > { %p1851_p1 = pnand %p1850_p0, %p2065_p4  ;;  %p1857_p5 = scmp.lt.s32.totalorder %s1855_s13, %s1849_s25 }
 0x428   : > { %v1219_v58 = vadd.f32 %v1218_v57, %v1217_v54  ;;  %v1242_v59 = vrot.slane %v1241_v56, 2 }
 0x429   : > { %p1852_p2 = pneg %p1851_p1  ;;  %p1858_p6 = por %p1857_p5, %p1856_p3 }
 0x42a   : > { %v1220_v60 = vrot.slane %v1219_v58, 1  ;;  %v1243_v61 = vadd.f32 %v1242_v59, %v1241_v56 }
 0x42b   : > { %p1859_p7 = pnand %p1858_p6, %p1852_p2 }
 0x42c   : > { %v1221_v63 = vadd.f32 %v1220_v60, %v1219_v58  ;;  %v1244_v0 = vrot.slane %v1243_v61, 1 }
 0x42e   : > { %v1222_v2 = vadd.f32 %v1221_v63, %v1208_v62  ;;  %v1245_v3 = vadd.f32 %v1244_v0, %v1243_v61 }
 0x430   : > { %1223 = vst [vmem:[%s2221_s14] sm:$0x1] %v1222_v2  ;;  %v1246_v6 = vadd.f32 %v1245_v3, %v1224_v1 }
 0x431   : > { %1862 = shalt.err (!%p1859_p7)
}
 0x432   : > { %s1863_s14 = scalar_lea.hbm %s2294_s24, 16  ;;  %s1867_s26 = scalar_lea.hbm %s2386_s10, 32 }
 0x433   : > { %p1864_p9 = scmp.ne.s32.totalorder %s2294_s24, %s1863_s14  ;;  %p1868_p12 = scmp.lt.s32.totalorder %s2294_s24, %s2386_s10 }
 0x434   : > { %p1869_p13 = scmp.lt.s32.totalorder %s1867_s26, %s1863_s14 }
 0x435   : > { %p1865_p10 = pnand %p1864_p9, %p2065_p4 }
 0x436   : > { %p1870_p0 = por %p1869_p13, %p1868_p12 }
 0x437   : > { %p1866_p11 = pneg %p1865_p10 }
 0x439   : > { %p1871_p1 = pnand %p1870_p0, %p1866_p11 }
 0x43b   : > { %1874 = shalt.err (!%p1871_p1)
}
 0x43c   : > { %s2403_s25 = scalar_lea.sflag [#allocation6], %s2284_s12  ;;  %1247 = vst [vmem:[%s2225_s15] sm:$0x1] %v1246_v6  ;;  %s1875_s23 = scalar_lea.vmem %s2304_s16, 16 }
 0x43d   : > { %1692 = dma.vmem_to_hbm [thread:$0]  (%p2065_p4), %s2296_s30, 16, %s2294_s24, %s2403_s25  }
 0x43e   : > { %p1876_p2 = scmp.ne.s32.totalorder %s2304_s16, %s1875_s23  ;;  %s1962_s21 = smov [#allocation7]  }
 0x43f   : > { %s1879_s13 = sshll.u32 %s1962_s21, 4  ;;  %s1880_s13 = int_to_ptr.vmem [resolvable:$false] %s1879_s13 }
 0x440   : > { %p1877_p3 = pnand %p1876_p2, %p2065_p4  ;;  %s1881_s14 = scalar_lea.vmem %s1880_s13, 32 }
 0x441   : > { %p1882_p6 = scmp.lt.s32.totalorder %s2304_s16, %s1880_s13  ;;  %p1883_p7 = scmp.lt.s32.totalorder %s1881_s14, %s1875_s23 }
 0x442   : > { %p1878_p5 = pneg %p1877_p3 }
 0x443   : > { %p1884_p9 = por %p1883_p7, %p1882_p6 }
 0x445   : > { %p1885_p10 = pnand %p1884_p9, %p1878_p5 }
 0x447   : > { %1888 = shalt.err (!%p1885_p10)
}
 0x448   : > { %s1889_s30 = scalar_lea.hbm %s2302_s28, 16  ;;  %s1893_s19 = scalar_lea.hbm %s2387_s11, 32 }
 0x449   : > { %p1890_p11 = scmp.ne.s32.totalorder %s2302_s28, %s1889_s30  ;;  %p1894_p0 = scmp.lt.s32.totalorder %s2302_s28, %s2387_s11 }
 0x44a   : > { %p1895_p1 = scmp.lt.s32.totalorder %s1893_s19, %s1889_s30 }
 0x44b   : > { %p1891_p12 = pnand %p1890_p11, %p2065_p4 }
 0x44c   : > { %p1896_p2 = por %p1895_p1, %p1894_p0 }
 0x44d   : > { %p1892_p13 = pneg %p1891_p12 }
 0x44f   : > { %p1897_p3 = pnand %p1896_p2, %p1892_p13 }
 0x451   : > { %1900 = shalt.err (!%p1897_p3)
}
 0x452   : > { %s2404_s0 = smov %s2403_s25 }
 0x453   : > { %1693 = dma.vmem_to_hbm [thread:$0]  (%p2065_p4), %s2304_s16, 16, %s2302_s28, %s2404_s0  }
 0x454 PF: > { %p1707_p5 = scmp.ge.s32.totalorder %s1955_s22, 2  ;;  %s1313_s25 = sand.u32 1, %s1935_s17  }
 0x455   : > { %s1314_s23 = scalar_lea.sflag [#allocation4], %s1313_s25 }
 0x456   : > { %p1698_p6 = pnand %p1707_p5, %p2074_p8 }
 0x458   : > { %p1699_p7 = pneg %p1698_p6 }
 0x45a   : > { %1926 = dma.done.wait (%p1699_p7), %s1314_s23, 1024  }
 0x45b   : > { %1928 = vsyncadd (%p1699_p7), %s1314_s23, 4294966272  ;;  %s2405_s21 = sadd.s32 4294967294, %s1955_s22  }
 0x45c   : > { %s1322_s27 = sand.u32 1, %s2405_s21  }
 0x45d   : > { %s1323_s13 = scalar_lea.sflag [#allocation6], %s1322_s27 }
 0x45e   : > { %1930 = dma.done.wait (%p1699_p7), %s1323_s13, 32  }
 0x45f   : > { %1932 = vsyncadd (%p1699_p7), %s1323_s13, 4294967264  ;;  %s28_s22 = sadd.s32 1, %s1955_s22   ;;  %s2406_s12 = sld [smem:[#allocation10_spill]] }
 0x460   : > { %p25_p4 = scmp.ge.s32.totalorder %s28_s22, 4   ;;  %s2407_s19 = sld [smem:[#allocation13_spill]] }
 0x461   : > { %s2408_s20 = sld [smem:[#allocation11_spill]]  ;;  %s2410_s17 = smov %s1939_s18 }
 0x462   : > { %s2409_s21 = sld [smem:[#allocation12_spill]]  ;;  %27 = sbr.rel (!%p25_p4) target bundleno = 8 (0x8), region = 139 }
 0x465   : > { %s2411_s18 = smov %s2406_s12 }
 0x467   :  { %1335 = vsyncpa [#allocation4], 1 }
 0x468   :  { %1337 = vsyncpa [#allocation4 + $0x1], 1 }
 0x469   :  { %1338 = vsyncpa [#allocation6], 1 }
 0x46a   :  { %1340 = vsyncpa [#allocation6 + $0x1], 1 }

// kernel: conditional_unet_decoder3d.7
= control target key start
LH: loop header
LB: loop body
LE: loop exit
PB: predicated region body
PF: predicated region fallthrough
CT: control target
= control target key end

     0   :  { %s1827_s17 = smov 0   ;;  %s1829_s18 = smov 0   ;;  %s2035_s0 = inlined_call_operand.vmem [shape: f32[2,1,128], index: 0, kind: input, shape index: {}]   ;;  %s2036_s1 = inlined_call_operand.vmem [shape: f32[2,1,128], index: 1, kind: input, shape index: {}]   ;;  %s2037_s2 = inlined_call_operand.vmem [shape: f32[2,64,128], index: 2, kind: input, shape index: {}]   ;;  %s2038_s3 = inlined_call_operand.vmem [shape: bf16[2,128,128], index: 3, kind: input, shape index: {}]   ;;  %s2039_s4 = inlined_call_operand.vmem [shape: bf16[2,128,128], index: 4, kind: input, shape index: {}]   ;;  %s2040_s5 = inlined_call_operand.vmem [shape: bf16[128,128], index: 5, kind: input, shape index: {}]   ;;  %s2041_s6 = inlined_call_operand.vmem [shape: f32[1,128], index: 6, kind: input, shape index: {}]   ;;  %s2042_s7 = inlined_call_operand.vmem [shape: bf16[128,128], index: 7, kind: input, shape index: {}]   ;;  %s2043_s8 = inlined_call_operand.vmem [shape: f32[1,128], index: 8, kind: input, shape index: {}]   ;;  %s2044_s9 = inlined_call_operand.vmem [shape: f32[2,64,128], index: 9, kind: output, shape index: {0}]   ;;  %s2045_s10 = inlined_call_operand.vmem [shape: f32[2,1,128], index: 10, kind: output, shape index: {1}]   ;;  %s2046_s11 = inlined_call_operand.vmem [shape: f32[2,1,128], index: 11, kind: output, shape index: {2}]  }
   0x1   :  { %s1831_s19 = smov 0  }
   0x2 LB: > { %s34_s20 = sadd.s32 1, %s1760_s18  ;;  %p1442_p0 = scmp.ge.s32.totalorder %s1764_s19, 1  ;;  %s1764_s19 = sphi %s1831_s19, %s22_s19   ;;  %s1760_s18 = sphi %s1829_s18, %s2048_s18   ;;  %s1756_s17 = sphi %s1827_s17, %s2047_s17  }
   0x3   : > { %p36_p1 = scmp.ge.s32.totalorder %s34_s20, 2  ;;  %p399_p2 = scmp.lt.s32.totalorder %s1764_s19, 3 }
   0x5   : > { %s2050_s20 = smov (%p36_p1, %s34_s20), 0  ;;  %p400_p3 = pnand %p1442_p0, %p399_p2 }
   0x6   : > { %p469_p4 = scmp.lt.s32.totalorder (!%p400_p3), %s1756_s17, 1 }
   0x7   : > { %403 = sbr.rel (%p400_p3) target bundleno = 1051 (0x41b), region = 56 }
   0xc   : > { %v1678_v0 = vld [vmem:[%s2040_s5 + $0x38] sm:$0xff]   ;;  %v1679_v1 = vld [vmem:[%s2040_s5 + $0x30] sm:$0xff]   ;;  %s2052_s17 = smov (!%p469_p4, %s1756_s17), 1  ;;  %v1680_v2 = vld [vmem:[%s2040_s5 + $0x28] sm:$0xff]  }
   0xd   : > { %1541 = vmatprep.subr.bf16.mxu0 %v1678_v0  ;;  %s471_s29 = scalar_lea.vmem %s2035_s0, %s2052_s17  ;;  %s1861_s30 = sshll.u32 %s2052_s17, 6  ;;  %v1681_v3 = vld [vmem:[%s2040_s5 + $0x20] sm:$0xff]   ;;  %v1682_v10 = vld [vmem:[%s2040_s5 + $0x18] sm:$0xff]   ;;  %v1683_v16 = vld [vmem:[%s2040_s5 + $0x10] sm:$0xff]  }
   0xe   : > { %1542 = vmatpush3.bf16.msra.mxu0 %v1678_v0  ;;  %s474_s14 = scalar_lea.vmem %s2036_s1, %s2052_s17  ;;  %s1871_s21 = scalar_lea.vmem %s2037_s2, %s1861_s30  ;;  %v1451_v6 = vld [vmem:[%s471_s29] ss:$0 sm:$0xff]  ;;  %v1684_v19 = vld [vmem:[%s2040_s5 + $0x8] sm:$0xff]  }
   0xf   : > { %1543 = vmatprep.subr.bf16.mxu0 %v1679_v1  ;;  %v1877_v4 = vld [vmem:[%s1871_s21] sm:$0xff]  ;;  %v1880_v5 = vld [vmem:[%s1871_s21 + $0x8] sm:$0xff]  ;;  %s1886_s26 = scalar_lea.vmem %s2038_s3, %s1861_s30  ;;  %v1899_v17 = vld [vmem:[%s1871_s21 + $0x10] sm:$0xff]  ;;  %s1911_s22 = scalar_lea.vmem %s2039_s4, %s1861_s30 }
  0x10   : > { %v527_v7 = vmul.f32 %v1451_v6, %v1877_v4  ;;  %v528_v8 = vmul.f32 %v1451_v6, %v1880_v5  ;;  %v1452_v9 = vld [vmem:[%s474_s14] ss:$0 sm:$0xff]  ;;  %v1686_v13 = vld [vmem:[%s1886_s26 + $0x38] sm:$0xff]   ;;  %v1687_v15 = vld [vmem:[%s1886_s26 + $0x30] sm:$0xff]   ;;  %v529_v24 = vmul.f32 %v1451_v6, %v1899_v17  ;;  %s1987_s12 = scalar_lea.vmem %s2045_s10, %s2052_s17  ;;  %s1993_s15 = scalar_lea.vmem %s2046_s11, %s2052_s17 }
  0x11   : > { %1565 = vmatprep.subr.bf16.mxu1 %v1686_v13  ;;  %v1902_v18 = vld [vmem:[%s1871_s21 + $0x18] sm:$0xff]  ;;  %v1914_v20 = vld [vmem:[%s1871_s21 + $0x20] sm:$0xff]  ;;  %v1917_v21 = vld [vmem:[%s1871_s21 + $0x28] sm:$0xff] }
  0x12   : > { %1544 = vmatpush3.bf16.msra.mxu0 %v1679_v1  ;;  %v542_v11 = vadd.f32 %v1452_v9, %v527_v7  ;;  %v543_v12 = vadd.f32 %v1452_v9, %v528_v8  ;;  %1566 = vmatpush3.bf16.xpose.msra.mxu1 %v1686_v13  ;;  %v1688_v22 = vld [vmem:[%s1886_s26 + $0x28] sm:$0xff]   ;;  %v1685_v23 = vld [vmem:[%s2040_s5] sm:$0xff]   ;;  %v530_v25 = vmul.f32 %v1451_v6, %v1902_v18  ;;  %v1928_v28 = vld [vmem:[%s1871_s21 + $0x30] sm:$0xff] }
  0x13   : > { %1545 = vmatprep.subr.bf16.mxu0 %v1680_v2  ;;  %1567 = vmatprep.subr.bf16.mxu1 %v1687_v15  ;;  %v531_v26 = vmul.f32 %v1451_v6, %v1914_v20  ;;  %v532_v27 = vmul.f32 %v1451_v6, %v1917_v21  ;;  %v1931_v29 = vld [vmem:[%s1871_s21 + $0x38] sm:$0xff]  ;;  %v544_v30 = vadd.f32 %v1452_v9, %v529_v24  ;;  %v1689_v34 = vld [vmem:[%s1886_s26 + $0x20] sm:$0xff]   ;;  %v1691_v43 = vld [vmem:[%s1886_s26 + $0x10] sm:$0xff]   ;;  %s2005_s21 = scalar_lea.vmem %s2044_s9, %s1861_s30 }
  0x14   : > { %v550_v14 = vpack.c.bf16 %v543_v12, %v542_v11  ;;  %v545_v31 = vadd.f32 %v1452_v9, %v530_v25  ;;  %v533_v36 = vmul.f32 %v1451_v6, %v1928_v28  ;;  %v534_v37 = vmul.f32 %v1451_v6, %v1931_v29  ;;  %v1690_v41 = vld [vmem:[%s1886_s26 + $0x18] sm:$0xff]   ;;  %v1692_v44 = vld [vmem:[%s1886_s26 + $0x8] sm:$0xff]   ;;  %v1693_v45 = vld [vmem:[%s1886_s26] sm:$0xff]  }
  0x15   : > { %v546_v32 = vadd.f32 %v1452_v9, %v531_v26  ;;  %v547_v33 = vadd.f32 %v1452_v9, %v532_v27  ;;  %v1453_v48 = vld [vmem:[%s2041_s6] ss:$0 sm:$0xff]  ;;  %v1694_v13 = vld [vmem:[%s1911_s22 + $0x38] sm:$0xff]  }
  0x16   : > { %1546 = vmatpush3.bf16.msra.mxu0 %v1680_v2  ;;  %1557 = vmatprep.mubr.bf16.mxu0 %v550_v14  ;;  %v551_v35 = vpack.c.bf16 %v545_v31, %v544_v30  ;;  %v548_v39 = vadd.f32 %v1452_v9, %v533_v36  ;;  %v549_v40 = vadd.f32 %v1452_v9, %v534_v37  ;;  %v1695_v14 = vld [vmem:[%s1911_s22 + $0x30] sm:$0xff]  }
  0x17   : > { %1547 = vmatprep.subr.bf16.mxu0 %v1681_v3  ;;  %v552_v38 = vpack.c.bf16 %v547_v33, %v546_v32 }
  0x18   : > { %v553_v42 = vpack.c.bf16 %v549_v40, %v548_v39  ;;  %v1697_v39 = vld [vmem:[%s1911_s22 + $0x20] sm:$0xff]  }
  0x1a   : > { %1548 = vmatpush3.bf16.msra.mxu0 %v1681_v3  ;;  %1568 = vmatpush3.bf16.xpose.msra.mxu1 %v1687_v15  ;;  %v698_v15 = vlaneseq }
  0x1b   : > { %1549 = vmatprep.subr.bf16.mxu0 %v1682_v10  ;;  %1569 = vmatprep.subr.bf16.mxu1 %v1688_v22 }
  0x1e   : > { %1550 = vmatpush3.bf16.msra.mxu0 %v1682_v10 }
  0x1f   : > { %1551 = vmatprep.subr.bf16.mxu0 %v1683_v16 }
  0x22   : > { %1552 = vmatpush3.bf16.msra.mxu0 %v1683_v16  ;;  %1570 = vmatpush3.bf16.xpose.msra.mxu1 %v1688_v22  ;;  %v699_v16 = vand.u32 127, %v698_v15 }
  0x23   : > { %1553 = vmatprep.subr.bf16.mxu0 %v1684_v19  ;;  %1571 = vmatprep.subr.bf16.mxu1 %v1689_v34 }
  0x24   : > { %vm700_vm0 = vcmp.lt.s32.totalorder %v699_v16, 8 }
  0x26   : > { %1554 = vmatpush3.bf16.msra.mxu0 %v1684_v19 }
  0x27   : > { %1555 = vmatprep.subr.bf16.mxu0 %v1685_v23 }
  0x2a   : > { %1556 = vmatpush3.bf16.msra.mxu0 %v1685_v23  ;;  %1572 = vmatpush3.bf16.xpose.msra.mxu1 %v1689_v34 }
  0x2b   : > { %1573 = vmatprep.subr.bf16.mxu1 %v1690_v41  ;;  %1589 = vmatprep.subr.bf16.mxu0 %v1694_v13 }
  0x2d   : > { %1558 = vmatmul.mubr.bf16.vlgmr.msra.gmra.mxu0 %v551_v35  ;;  %v1696_v35 = vld [vmem:[%s1911_s22 + $0x28] sm:$0xff]  }
  0x2e   : > { %1561 = vmatprep.mubr.bf16.mxu0 %v552_v38  ;;  %1590 = vmatpush3.bf16.msra.mxu0 %v1694_v13 }
  0x2f   : > { %1591 = vmatprep.subr.bf16.mxu0 %v1695_v14 }
  0x32   : > { %1574 = vmatpush3.bf16.xpose.msra.mxu1 %v1690_v41  ;;  %1592 = vmatpush3.bf16.msra.mxu0 %v1695_v14  ;;  %v1698_v41 = vld [vmem:[%s1911_s22 + $0x18] sm:$0xff]  }
  0x33   : > { %1575 = vmatprep.subr.bf16.mxu1 %v1691_v43  ;;  %1593 = vmatprep.subr.bf16.mxu0 %v1696_v35 }
  0x35   : > { %1562 = vmatmul.mubr.bf16.gmra.mxu0 %v553_v42  ;;  %v1699_v42 = vld [vmem:[%s1911_s22 + $0x10] sm:$0xff]  }
  0x36   : > { %1594 = vmatpush3.bf16.msra.mxu0 %v1696_v35 }
  0x37   : > { %1595 = vmatprep.subr.bf16.mxu0 %v1697_v39 }
  0x3a   : > { %1576 = vmatpush3.bf16.xpose.msra.mxu1 %v1691_v43  ;;  %1596 = vmatpush3.bf16.msra.mxu0 %v1697_v39  ;;  %v1700_v43 = vld [vmem:[%s1911_s22 + $0x8] sm:$0xff]  }
  0x3b   : > { %1577 = vmatprep.subr.bf16.mxu1 %v1692_v44  ;;  %1597 = vmatprep.subr.bf16.mxu0 %v1698_v41 }
  0x3e   : > { %1598 = vmatpush3.bf16.msra.mxu0 %v1698_v41 }
  0x3f   : > { %1599 = vmatprep.subr.bf16.mxu0 %v1699_v42 }
  0x42   : > { %1578 = vmatpush3.bf16.xpose.msra.mxu1 %v1692_v44  ;;  %1600 = vmatpush3.bf16.msra.mxu0 %v1699_v42  ;;  %v1701_v44 = vld [vmem:[%s1911_s22] sm:$0xff]  }
  0x43   : > { %1579 = vmatprep.subr.bf16.mxu1 %v1693_v45  ;;  %1601 = vmatprep.subr.bf16.mxu0 %v1700_v43 }
  0x46   : > { %1602 = vmatpush3.bf16.msra.mxu0 %v1700_v43 }
  0x47   : > { %1603 = vmatprep.subr.bf16.mxu0 %v1701_v44 }
  0x4a   : > { %1580 = vmatpush3.bf16.xpose.msra.mxu1 %v1693_v45  ;;  %1604 = vmatpush3.bf16.msra.mxu0 %v1701_v44 }
  0xed   : > { %v1559_v46 = vpop.f32.mrf.mxu0 }
  0xee   : > { %v668_v52 = vadd.f32 %v1559_v46, %v1453_v48 }
  0xef   : > { %v659_v47 = vpop.f32.mrf.mxu0 }
  0xf0   : > { %v660_v50 = vadd.f32 %v1453_v48, %v659_v47  ;;  %v692_v59 = vmul.f32 0.088388346, %v668_v52 }
  0xf1   : > { %v1560_v49 = vpop.f32.mrf.mxu0 }
  0xf2   : > { %v671_v51 = vadd.f32 %v1560_v49, %v1453_v48  ;;  %v690_v57 = vmul.f32 0.088388346, %v660_v50 }
  0xf3   : > { %v662_v53 = vpop.f32.mrf.mxu0 }
  0xf4   : > { %v663_v54 = vadd.f32 %v1453_v48, %v662_v53  ;;  %v693_v55 = vmul.f32 0.088388346, %v671_v51 }
  0xf5   : > { %v1563_v56 = vpop.f32.mrf.mxu0 }
  0xf6   : > { %v691_v58 = vmul.f32 0.088388346, %v663_v54  ;;  %v702_v62 = vpack.c.bf16 %v693_v55, %v692_v59  ;;  %v684_v2 = vadd.f32 %v1563_v56, %v1453_v48 }
  0xf7   : > { %v675_v60 = vpop.f32.mrf.mxu0 }
  0xf8   : > { %v701_v61 = vpack.c.bf16 %v691_v58, %v690_v57  ;;  %v676_v0 = vadd.f32 %v1453_v48, %v675_v60  ;;  %v696_v10 = vmul.f32 0.088388346, %v684_v2 }
  0xf9   : > { %v1564_v63 = vpop.f32.mrf.mxu0 }
  0xfa   : > { %v687_v1 = vadd.f32 %v1564_v63, %v1453_v48  ;;  %1581 = vmatprep.mubr.bf16.mxu1 %v701_v61  ;;  %v694_v8 = vmul.f32 0.088388346, %v676_v0 }
  0xfb   : > { %v678_v3 = vpop.f32.mrf.mxu0  ;;  %1582 = vmatmul.mubr.bf16.vlgmr.msra.gmra.mxu1 %v702_v62 }
  0xfc   : > { %v679_v6 = vadd.f32 %v1453_v48, %v678_v3  ;;  %v697_v7 = vmul.f32 0.088388346, %v687_v1 }
  0xfe   : > { %v695_v9 = vmul.f32 0.088388346, %v679_v6  ;;  %v704_v12 = vpack.c.bf16 %v697_v7, %v696_v10 }
 0x100   : > { %v703_v11 = vpack.c.bf16 %v695_v9, %v694_v8 }
 0x102   : > { %1585 = vmatprep.mubr.bf16.mxu1 %v703_v11 }
 0x103   : > { %1586 = vmatmul.mubr.bf16.gmra.mxu1 %v704_v12 }
 0x1bb   : > { %v1583_v19 = vpop.f32.mrf.mxu1 }
 0x1bc   : > { %v838_v22 = vsel %vm700_vm0, %v1583_v19, -1e+30 }
 0x1bd   : > { %848 = vmax.xlane.f32.xlu1 %v838_v22  ;;  %v803_v23 = vpop.f32.mrf.mxu1 }
 0x1be   : > { %v836_v24 = vsel %vm700_vm0, %v803_v23, -1e+30  ;;  %v1702_v23 = vld [vmem:[%s2042_s7 + $0x38] sm:$0xff]  }
 0x1bf   : > { %844 = vmax.xlane.f32.xlu0 %v836_v24  ;;  %v1584_v25 = vpop.f32.mrf.mxu1  ;;  %1613 = vmatprep.subr.bf16.mxu0 %v1702_v23 }
 0x1c0   : > { %v839_v26 = vsel %vm700_vm0, %v1584_v25, -1e+30  ;;  %1637 = vmatprep.subr.bf16.mxu1 %v1702_v23  ;;  %v1704_v25 = vld [vmem:[%s2042_s7 + $0x28] sm:$0xff]  }
 0x1c1   : > { %850 = vmax.xlane.f32.xlu1 %v839_v26  ;;  %v806_v27 = vpop.f32.mrf.mxu1  ;;  %1645 = vmatpush3.bf16.msra.mxu1 %v1702_v23 }
 0x1c2   : > { %v837_v30 = vsel %vm700_vm0, %v806_v27, -1e+30  ;;  %v1706_v27 = vld [vmem:[%s2042_s7 + $0x18] sm:$0xff]  }
 0x1c3   : > { %846 = vmax.xlane.f32.xlu0 %v837_v30  ;;  %v1587_v31 = vpop.f32.mrf.mxu1 }
 0x1c4   : > { %v842_v37 = vsel %vm700_vm0, %v1587_v31, -1e+30  ;;  %v1708_v31 = vld [vmem:[%s2042_s7 + $0x8] sm:$0xff]  }
 0x1c5   : > { %v819_v32 = vpop.f32.mrf.mxu1 }
 0x1c6   : > { %v840_v33 = vsel %vm700_vm0, %v819_v32, -1e+30  ;;  %v1709_v32 = vld [vmem:[%s2042_s7] sm:$0xff]  }
 0x1c7   : > { %852 = vmax.xlane.f32.xlu0 %v840_v33  ;;  %v1588_v34 = vpop.f32.mrf.mxu1 }
 0x1c8   : > { %v843_v40 = vsel %vm700_vm0, %v1588_v34, -1e+30 }
 0x1c9   : > { %v822_v36 = vpop.f32.mrf.mxu1 }
 0x1ca   : > { %v841_v38 = vsel %vm700_vm0, %v822_v36, -1e+30 }
 0x1cb   : > { %856 = vmax.xlane.f32.xlu0 %v842_v37  ;;  %854 = vmax.xlane.f32.xlu1 %v841_v38 }
 0x1cf   : > { %858 = vmax.xlane.f32.xlu1 %v843_v40 }
 0x246   : > { %v849_v45 = vpop.xlane.xlu1 %848 }
 0x247   : > { %v862_v46 = vsub.f32 %v838_v22, %v849_v45 }
 0x248   : > { %v845_v47 = vpop.xlane.xlu0 %844 }
 0x249   : > { %v860_v48 = vsub.f32 %v836_v24, %v845_v47  ;;  %v872_v50 = vmul.f32 1.442695, %v862_v46  ;;  %v1703_v24 = vld [vmem:[%s2042_s7 + $0x30] sm:$0xff]  }
 0x24a   : > { %v851_v49 = vpop.xlane.xlu1 %850  ;;  %1638 = vmatprep.subr.bf16.mxu1 %v1703_v24 }
 0x24b   : > { %v868_v51 = vmul.f32 1.442695, %v860_v48  ;;  %v863_v52 = vsub.f32 %v839_v26, %v851_v49  ;;  %1646 = vmatpush3.bf16.msra.mxu1 %v1703_v24  ;;  %v1705_v26 = vld [vmem:[%s2042_s7 + $0x20] sm:$0xff]  }
 0x24c   : > { %v847_v53 = vpop.xlane.xlu0 %846  ;;  %1639 = vmatprep.subr.bf16.mxu1 %v1704_v25 }
 0x24d   : > { %1710 = vpow2.f32 %v868_v51  ;;  %v874_v54 = vmul.f32 1.442695, %v863_v52  ;;  %v861_v55 = vsub.f32 %v837_v30, %v847_v53  ;;  %v1707_v30 = vld [vmem:[%s2042_s7 + $0x10] sm:$0xff]  }
 0x24e   : > { %1712 = vpow2.f32 %v872_v50 }
 0x24f   : > { %v870_v56 = vmul.f32 1.442695, %v861_v55  ;;  %1714 = vpow2.f32 %v874_v54  ;;  %1647 = vmatpush3.bf16.msra.mxu1 %v1704_v25 }
 0x250   : > { %v853_v57 = vpop.xlane.xlu0 %852  ;;  %1640 = vmatprep.subr.bf16.mxu1 %v1705_v26 }
 0x251   : > { %1716 = vpow2.f32 %v870_v56  ;;  %v864_v58 = vsub.f32 %v840_v33, %v853_v57 }
 0x253   : > { %v876_v59 = vmul.f32 1.442695, %v864_v58  ;;  %1648 = vmatpush3.bf16.msra.mxu1 %v1705_v26 }
 0x254   : > { %v857_v60 = vpop.xlane.xlu0 %856  ;;  %v855_v61 = vpop.xlane.xlu1 %854  ;;  %1641 = vmatprep.subr.bf16.mxu1 %v1706_v27 }
 0x255   : > { %1718 = vpow2.f32 %v876_v59  ;;  %v866_v62 = vsub.f32 %v842_v37, %v857_v60  ;;  %v865_v63 = vsub.f32 %v841_v38, %v855_v61 }
 0x257   : > { %v880_v0 = vmul.f32 1.442695, %v866_v62  ;;  %v878_v1 = vmul.f32 1.442695, %v865_v63  ;;  %1649 = vmatpush3.bf16.msra.mxu1 %v1706_v27 }
 0x258   : > { %v859_v2 = vpop.xlane.xlu1 %858  ;;  %1642 = vmatprep.subr.bf16.mxu1 %v1707_v30 }
 0x259   : > { %1720 = vpow2.f32 %v880_v0  ;;  %v867_v3 = vsub.f32 %v843_v40, %v859_v2 }
 0x25a   : > { %v1711_v6 = vpop.eup %1710  ;;  %1722 = vpow2.f32 %v878_v1 }
 0x25b   : > { %v882_v7 = vmul.f32 1.442695, %v867_v3  ;;  %884 = vadd.xlane.f32.xlu0 %v1711_v6  ;;  %v1713_v8 = vpop.eup %1712  ;;  %1650 = vmatpush3.bf16.msra.mxu1 %v1707_v30 }
 0x25c   : > { %v1715_v9 = vpop.eup %1714  ;;  %1643 = vmatprep.subr.bf16.mxu1 %v1708_v31 }
 0x25d   : > { %1724 = vpow2.f32 %v882_v7  ;;  %v901_v12 = vpack.c.bf16 %v1715_v9, %v1713_v8  ;;  %v1766_v7 = vmov 0.0  }
 0x25e   : > { %v1717_v10 = vpop.eup %1716  ;;  %1217 = vst [vmem:[%s1987_s12] sm:$0x1] %v1766_v7  ;;  %1218 = vst [vmem:[%s1993_s15] sm:$0x1] %v1766_v7 }
 0x25f   : > { %888 = vadd.xlane.f32.xlu0 %v1713_v8  ;;  %886 = vadd.xlane.f32.xlu1 %v1717_v10  ;;  %v900_v11 = vpack.c.bf16 %v1717_v10, %v1711_v6 }
 0x260   : > { %1651 = vmatpush3.bf16.msra.mxu1 %v1708_v31 }
 0x261   : > { %1605 = vmatprep.mubr.bf16.mxu0 %v900_v11  ;;  %1644 = vmatprep.subr.bf16.mxu1 %v1709_v32 }
 0x262   : > { %v1719_v13 = vpop.eup %1718  ;;  %1606 = vmatmul.mubr.bf16.vlgmr.msra.gmra.mxu0 %v901_v12 }
 0x263   : > { %892 = vadd.xlane.f32.xlu0 %v1719_v13  ;;  %890 = vadd.xlane.f32.xlu1 %v1715_v9  ;;  %v1486_v9 = vld [vmem:[%s2043_s8] ss:$0 sm:$0xff] }
 0x264   : > { %1614 = vmatpush3.bf16.msra.mxu0 %v1702_v23  ;;  %1652 = vmatpush3.bf16.msra.mxu1 %v1709_v32 }
 0x265   : > { %1615 = vmatprep.subr.bf16.mxu0 %v1703_v24 }
 0x266   : > { %v1721_v14 = vpop.eup %1720 }
 0x267   : > { %v1723_v15 = vpop.eup %1722  ;;  %896 = vadd.xlane.f32.xlu0 %v1721_v14 }
 0x268   : > { %894 = vadd.xlane.f32.xlu1 %v1723_v15  ;;  %v902_v16 = vpack.c.bf16 %v1723_v15, %v1719_v13  ;;  %1616 = vmatpush3.bf16.msra.mxu0 %v1703_v24 }
 0x269   : > { %1617 = vmatprep.subr.bf16.mxu0 %v1704_v25 }
 0x26a   : > { %v1725_v19 = vpop.eup %1724  ;;  %1609 = vmatprep.mubr.bf16.mxu0 %v902_v16 }
 0x26b   : > { %v903_v22 = vpack.c.bf16 %v1725_v19, %v1721_v14 }
 0x26c   : > { %898 = vadd.xlane.f32.xlu1 %v1725_v19  ;;  %1618 = vmatpush3.bf16.msra.mxu0 %v1704_v25 }
 0x26d   : > { %1610 = vmatmul.mubr.bf16.gmra.mxu0 %v903_v22  ;;  %1619 = vmatprep.subr.bf16.mxu0 %v1705_v26 }
 0x270   : > { %1620 = vmatpush3.bf16.msra.mxu0 %v1705_v26 }
 0x271   : > { %1621 = vmatprep.subr.bf16.mxu0 %v1706_v27 }
 0x274   : > { %1622 = vmatpush3.bf16.msra.mxu0 %v1706_v27 }
 0x275   : > { %1623 = vmatprep.subr.bf16.mxu0 %v1707_v30 }
 0x278   : > { %1624 = vmatpush3.bf16.msra.mxu0 %v1707_v30 }
 0x279   : > { %1625 = vmatprep.subr.bf16.mxu0 %v1708_v31 }
 0x27c   : > { %1626 = vmatpush3.bf16.msra.mxu0 %v1708_v31 }
 0x27d   : > { %1627 = vmatprep.subr.bf16.mxu0 %v1709_v32 }
 0x280   : > { %1628 = vmatpush3.bf16.msra.mxu0 %v1709_v32 }
 0x2e4   : > { %v885_v34 = vpop.xlane.xlu0 %884 }
 0x2e5   : > { %1726 = vrcp.f32 %v885_v34 }
 0x2e8   : > { %v887_v33 = vpop.xlane.xlu1 %886  ;;  %v889_v36 = vpop.xlane.xlu0 %888 }
 0x2ec   : > { %v891_v35 = vpop.xlane.xlu1 %890  ;;  %v893_v38 = vpop.xlane.xlu0 %892 }
 0x2ed   : > { %1728 = vrcp.f32 %v891_v35 }
 0x2ee   : > { %1730 = vrcp.f32 %v887_v33 }
 0x2ef   : > { %1732 = vrcp.f32 %v889_v36 }
 0x2f0   : > { %1734 = vrcp.f32 %v893_v38  ;;  %v897_v41 = vpop.xlane.xlu0 %896 }
 0x2f1   : > { %v895_v37 = vpop.xlane.xlu1 %894 }
 0x2f2   : > { %v1727_v43 = vpop.eup %1726 }
 0x2f5   : > { %v899_v39 = vpop.xlane.xlu1 %898 }
 0x2f6   : > { %1736 = vrcp.f32 %v899_v39 }
 0x2f7   : > { %1738 = vrcp.f32 %v895_v37 }
 0x2f8   : > { %1740 = vrcp.f32 %v897_v41 }
 0x2fa   : > { %v1729_v45 = vpop.eup %1728 }
 0x2fb   : > { %v1731_v46 = vpop.eup %1730 }
 0x2fc   : > { %v1733_v49 = vpop.eup %1732 }
 0x2fd   : > { %v1735_v57 = vpop.eup %1734 }
 0x303   : > { %v1737_v59 = vpop.eup %1736 }
 0x304   : > { %v1739_v60 = vpop.eup %1738 }
 0x305   : > { %v1741_v63 = vpop.eup %1740 }
 0x322   : > { %v1607_v40 = vpop.f32.mrf.mxu0 }
 0x323   : > { %v1043_v52 = vmul.f32 %v1733_v49, %v1607_v40 }
 0x324   : > { %v1002_v42 = vpop.f32.mrf.mxu0 }
 0x325   : > { %v1041_v50 = vmul.f32 %v1727_v43, %v1002_v42 }
 0x326   : > { %v1608_v44 = vpop.f32.mrf.mxu0 }
 0x327   : > { %v1044_v47 = vmul.f32 %v1729_v45, %v1608_v44 }
 0x328   : > { %v1005_v48 = vpop.f32.mrf.mxu0 }
 0x329   : > { %v1042_v51 = vmul.f32 %v1731_v46, %v1005_v48  ;;  %v1050_v54 = vpack.c.bf16 %v1044_v47, %v1043_v52 }
 0x32b   : > { %v1049_v53 = vpack.c.bf16 %v1042_v51, %v1041_v50 }
 0x32d   : > { %v1611_v55 = vpop.f32.mrf.mxu0  ;;  %1629 = vmatprep.mubr.bf16.mxu0 %v1049_v53 }
 0x32e   : > { %1630 = vmatmul.mubr.bf16.vlgmr.msra.gmra.mxu0 %v1050_v54  ;;  %v1047_v2 = vmul.f32 %v1741_v63, %v1611_v55 }
 0x32f   : > { %v1018_v56 = vpop.f32.mrf.mxu0 }
 0x330   : > { %v1045_v0 = vmul.f32 %v1735_v57, %v1018_v56 }
 0x331   : > { %v1612_v58 = vpop.f32.mrf.mxu0 }
 0x332   : > { %v1048_v61 = vmul.f32 %v1737_v59, %v1612_v58 }
 0x333   : > { %v1021_v62 = vpop.f32.mrf.mxu0 }
 0x334   : > { %v1046_v1 = vmul.f32 %v1739_v60, %v1021_v62  ;;  %v1052_v6 = vpack.c.bf16 %v1048_v61, %v1047_v2  ;;  %v1219_v62 = vld [vmem:[%s1987_s12] sm:$0x1] }
 0x336   : > { %v1051_v3 = vpack.c.bf16 %v1046_v1, %v1045_v0  ;;  %v1235_v1 = vld [vmem:[%s1993_s15] sm:$0x1] }
 0x338   : > { %1633 = vmatprep.mubr.bf16.mxu1 %v1051_v3 }
 0x339   : > { %1634 = vmatmul.mubr.bf16.vlgmr.msra.gmra.mxu1 %v1052_v6 }
 0x3ee   : > { %v1631_v8 = vpop.f32.mrf.mxu0 }
 0x3ef   : > { %v1184_v10 = vadd.f32 %v1631_v8, %v1899_v17 }
 0x3f0   : > { %v1151_v11 = vpop.f32.mrf.mxu0 }
 0x3f1   : > { %v1199_v12 = vadd.f32 %v1486_v9, %v1184_v10  ;;  %v1182_v13 = vadd.f32 %v1151_v11, %v1877_v4 }
 0x3f2   : > { %v1632_v14 = vpop.f32.mrf.mxu0 }
 0x3f3   : > { %1207 = vst [vmem:[%s2005_s21 + $0x10] sm:$0xff] %v1199_v12  ;;  %v1197_v15 = vadd.f32 %v1486_v9, %v1182_v13  ;;  %v1185_v16 = vadd.f32 %v1632_v14, %v1902_v18  ;;  %v1238_v30 = vmul.f32 %v1199_v12, %v1199_v12 }
 0x3f4   : > { %v1154_v19 = vpop.f32.mrf.mxu0 }
 0x3f5   : > { %1205 = vst [vmem:[%s2005_s21] sm:$0xff] %v1197_v15  ;;  %v1200_v17 = vadd.f32 %v1486_v9, %v1185_v16  ;;  %v1183_v22 = vadd.f32 %v1154_v19, %v1880_v5  ;;  %v1236_v24 = vmul.f32 %v1197_v15, %v1197_v15 }
 0x3f7   : > { %1208 = vst [vmem:[%s2005_s21 + $0x18] sm:$0xff] %v1200_v17  ;;  %v1198_v23 = vadd.f32 %v1486_v9, %v1183_v22  ;;  %v1239_v36 = vmul.f32 %v1200_v17, %v1200_v17 }
 0x3f9   : > { %1206 = vst [vmem:[%s2005_s21 + $0x8] sm:$0xff] %v1198_v23  ;;  %v1220_v25 = vadd.f32 %v1198_v23, %v1197_v15  ;;  %v1237_v26 = vmul.f32 %v1198_v23, %v1198_v23  ;;  %v1635_v27 = vpop.f32.mrf.mxu1 }
 0x3fa   : > { %v1188_v4 = vadd.f32 %v1635_v27, %v1928_v28 }
 0x3fb   : > { %v1221_v31 = vadd.f32 %v1220_v25, %v1199_v12  ;;  %v1244_v32 = vadd.f32 %v1237_v26, %v1236_v24  ;;  %v1167_v18 = vpop.f32.mrf.mxu1 }
 0x3fc   : > { %v1203_v33 = vadd.f32 %v1486_v9, %v1188_v4  ;;  %v1186_v34 = vadd.f32 %v1167_v18, %v1914_v20 }
 0x3fd   : > { %v1245_v5 = vadd.f32 %v1244_v32, %v1238_v30  ;;  %v1636_v35 = vpop.f32.mrf.mxu1  ;;  %v1222_v38 = vadd.f32 %v1221_v31, %v1200_v17 }
 0x3fe   : > { %1211 = vst [vmem:[%s2005_s21 + $0x30] sm:$0xff] %v1203_v33  ;;  %v1201_v37 = vadd.f32 %v1486_v9, %v1186_v34  ;;  %v1189_v39 = vadd.f32 %v1636_v35, %v1931_v29  ;;  %v1242_v48 = vmul.f32 %v1203_v33, %v1203_v33 }
 0x3ff   : > { %v1170_v40 = vpop.f32.mrf.mxu1  ;;  %v1246_v41 = vadd.f32 %v1245_v5, %v1239_v36 }
 0x400   : > { %1209 = vst [vmem:[%s2005_s21 + $0x20] sm:$0xff] %v1201_v37  ;;  %v1240_v28 = vmul.f32 %v1201_v37, %v1201_v37  ;;  %v1204_v42 = vadd.f32 %v1486_v9, %v1189_v39  ;;  %v1187_v43 = vadd.f32 %v1170_v40, %v1917_v21  ;;  %v1223_v44 = vadd.f32 %v1222_v38, %v1201_v37 }
 0x402   : > { %1212 = vst [vmem:[%s2005_s21 + $0x38] sm:$0xff] %v1204_v42  ;;  %v1202_v45 = vadd.f32 %v1486_v9, %v1187_v43  ;;  %v1247_v20 = vadd.f32 %v1246_v41, %v1240_v28  ;;  %v1243_v51 = vmul.f32 %v1204_v42, %v1204_v42 }
 0x404   : > { %1210 = vst [vmem:[%s2005_s21 + $0x28] sm:$0xff] %v1202_v45  ;;  %v1224_v46 = vadd.f32 %v1223_v44, %v1202_v45  ;;  %v1241_v47 = vmul.f32 %v1202_v45, %v1202_v45 }
 0x406   : > { %v1225_v49 = vadd.f32 %v1224_v46, %v1203_v33  ;;  %v1248_v50 = vadd.f32 %v1247_v20, %v1241_v47 }
 0x408   : > { %v1226_v29 = vadd.f32 %v1225_v49, %v1204_v42  ;;  %v1249_v52 = vadd.f32 %v1248_v50, %v1242_v48 }
 0x40a   : > { %v1227_v53 = vrot.slane %v1226_v29, 4  ;;  %v1250_v54 = vadd.f32 %v1249_v52, %v1243_v51 }
 0x40c   : > { %v1228_v55 = vadd.f32 %v1227_v53, %v1226_v29  ;;  %v1251_v21 = vrot.slane %v1250_v54, 4 }
 0x40e   : > { %v1229_v56 = vrot.slane %v1228_v55, 2  ;;  %v1252_v57 = vadd.f32 %v1251_v21, %v1250_v54 }
 0x410   : > { %v1230_v58 = vadd.f32 %v1229_v56, %v1228_v55  ;;  %v1253_v59 = vrot.slane %v1252_v57, 2 }
 0x412   : > { %v1231_v60 = vrot.slane %v1230_v58, 1  ;;  %v1254_v61 = vadd.f32 %v1253_v59, %v1252_v57 }
 0x414   : > { %v1232_v63 = vadd.f32 %v1231_v60, %v1230_v58  ;;  %v1255_v0 = vrot.slane %v1254_v61, 1 }
 0x416   : > { %v1233_v2 = vadd.f32 %v1232_v63, %v1219_v62  ;;  %v1256_v3 = vadd.f32 %v1255_v0, %v1254_v61 }
 0x418   : > { %1234 = vst [vmem:[%s1987_s12] sm:$0x1] %v1233_v2  ;;  %v1257_v6 = vadd.f32 %v1256_v3, %v1235_v1 }
 0x41a   : > { %1258 = vst [vmem:[%s1993_s15] sm:$0x1] %v1257_v6 }
 0x41b PF: > { %s22_s19 = sadd.s32 1, %s1764_s19   ;;  %s2047_s17 = smov %s1760_s18 }
 0x41c   : > { %p19_p5 = scmp.ge.s32.totalorder %s22_s19, 4   ;;  %s2048_s18 = smov %s2050_s20 }
 0x41e   :  { %21 = sbr.rel (!%p19_p5) target bundleno = 2 (0x2), region = 126 }

</bundles_post_ra>
